<compile_context>
chip_gen: v7x
topology: tpu7x:2x2x1
jax: 0.10.0
libtpu: 0.0.40
codegen_flags: <defaults>
</compile_context>

<pallas_src>
import math
import functools

import jax
import jax.numpy as jnp
from jax import lax
from jax.experimental import pallas as pl
from jax.experimental.pallas import tpu as pltpu


# ------------------------------ configuration -------------------------------

_ACT_DTYPE = jnp.bfloat16              # activations + matmul weights (MXU bf16)
_NEG = -1e9                            # stand-in for -inf (keeps rows finite)
_VMEM_LIMIT_BYTES = 48 * 1024 * 1024   # <= v7x 64 MiB physical, > 16/32 MiB defaults
_APPROX_RECIP = True                   # EUP reciprocal for softmax denominator


def _cparams(n_axes, last_arbitrary=False):
    sem = ["parallel"] * n_axes
    if last_arbitrary:
        sem[-1] = "arbitrary"
    return pltpu.CompilerParams(dimension_semantics=tuple(sem),
                                vmem_limit_bytes=_VMEM_LIMIT_BYTES)


def _row_tile(n, target):
    """Row tile: multiple of 8, <= target; grid uses pl.cdiv (ragged tile masked)."""
    t = min(target, ((n + 7) // 8) * 8)
    return max(8, (t // 8) * 8)


def _reduce_tile(n, target):
    """Tile for a reduction axis: must divide n exactly (padding would pollute sums)."""
    if n <= target:
        return n
    t = (target // 128) * 128
    while t >= 128:
        if n % t == 0:
            return t
        t -= 128
    return n


def _vocab_tile(v, target):
    """Output (vocab) tile: full dim if small, else a multiple of 128 (cdiv grid)."""
    if v <= target:
        return v
    return max(128, (target // 128) * 128)


# ------------------------------ Pallas kernels -------------------------------

def _linear_kernel(x_ref, w_ref, b_ref, o_ref):
    # y = x @ W^T + b ; x, W in bf16, accumulate f32 on the MXU, bias in f32.
    y = lax.dot_general(x_ref[...], w_ref[...], (((1,), (1,)), ((), ())),
                        preferred_element_type=jnp.float32)
    o_ref[...] = (y + b_ref[...]).astype(o_ref.dtype)


def linear(x, w, b, *, row_tile=512):
    # x: (N, din) bf16, w: (dout, din) bf16, b: (dout,) f32
    N, din = x.shape
    dout = w.shape[0]
    tm = _row_tile(N, row_tile)
    return pl.pallas_call(
        _linear_kernel,
        out_shape=jax.ShapeDtypeStruct((N, dout), x.dtype),
        grid=(pl.cdiv(N, tm),),
        in_specs=[pl.BlockSpec((tm, din), lambda i: (i, 0)),
                  pl.BlockSpec((dout, din), lambda i: (0, 0)),
                  pl.BlockSpec((1, dout), lambda i: (0, 0))],
        out_specs=pl.BlockSpec((tm, dout), lambda i: (i, 0)),
        compiler_params=_cparams(1),
    )(x, w, b.reshape(1, dout))


def _layernorm_f32(y, g, beta, eps):
    mu = jnp.mean(y, axis=-1, keepdims=True)
    var = jnp.mean(jnp.square(y - mu), axis=-1, keepdims=True)
    return (y - mu) * lax.rsqrt(var + eps) * g + beta


def _layernorm_kernel(x_ref, g_ref, b_ref, o_ref, *, eps):
    y = x_ref[...].astype(jnp.float32)
    o_ref[...] = _layernorm_f32(y, g_ref[...], b_ref[...], eps).astype(o_ref.dtype)


def layernorm(x, g, b, *, eps=1e-5, row_tile=1024):
    N, d = x.shape
    tm = _row_tile(N, row_tile)
    return pl.pallas_call(
        functools.partial(_layernorm_kernel, eps=eps),
        out_shape=jax.ShapeDtypeStruct((N, d), x.dtype),
        grid=(pl.cdiv(N, tm),),
        in_specs=[pl.BlockSpec((tm, d), lambda i: (i, 0)),
                  pl.BlockSpec((1, d), lambda i: (0, 0)),
                  pl.BlockSpec((1, d), lambda i: (0, 0))],
        out_specs=pl.BlockSpec((tm, d), lambda i: (i, 0)),
        compiler_params=_cparams(1),
    )(x, g.reshape(1, d), b.reshape(1, d))


def _proj_add_ln_kernel(a_ref, r_ref, w_ref, b_ref, g_ref, beta_ref, o_ref, *, eps):
    # LayerNorm(residual + attn_out @ Wo^T + bo)  -- fused epilogue, bf16 matmul.
    y = lax.dot_general(a_ref[...], w_ref[...], (((1,), (1,)), ((), ())),
                        preferred_element_type=jnp.float32)
    y = y + b_ref[...] + r_ref[...].astype(jnp.float32)
    o_ref[...] = _layernorm_f32(y, g_ref[...], beta_ref[...], eps).astype(o_ref.dtype)


def proj_add_ln(attn, resid, w, b, g, beta, *, eps=1e-5, row_tile=512):
    N, d = attn.shape
    tm = _row_tile(N, row_tile)
    return pl.pallas_call(
        functools.partial(_proj_add_ln_kernel, eps=eps),
        out_shape=jax.ShapeDtypeStruct((N, d), attn.dtype),
        grid=(pl.cdiv(N, tm),),
        in_specs=[pl.BlockSpec((tm, d), lambda i: (i, 0)),
                  pl.BlockSpec((tm, d), lambda i: (i, 0)),
                  pl.BlockSpec((d, d), lambda i: (0, 0)),
                  pl.BlockSpec((1, d), lambda i: (0, 0)),
                  pl.BlockSpec((1, d), lambda i: (0, 0)),
                  pl.BlockSpec((1, d), lambda i: (0, 0))],
        out_specs=pl.BlockSpec((tm, d), lambda i: (i, 0)),
        compiler_params=_cparams(1),
    )(attn, resid, w, b.reshape(1, d), g.reshape(1, d), beta.reshape(1, d))


def _ffn_add_ln_kernel(x_ref, w1_ref, b1_ref, w2_ref, b2_ref, g_ref, beta_ref,
                       o_ref, acc_ref, *, eps):
    # LayerNorm(x + W2 @ relu(W1 @ x)) with dim_ff tiled as a reduction axis:
    # acc += relu(x @ W1_k^T + b1_k) @ W2_k^T, accumulated in f32 scratch.
    k = pl.program_id(1)

    @pl.when(k == 0)
    def _():
        acc_ref[...] = x_ref[...].astype(jnp.float32) + b2_ref[...]

    h = lax.dot_general(x_ref[...], w1_ref[...], (((1,), (1,)), ((), ())),
                        preferred_element_type=jnp.float32) + b1_ref[...]
    h = jnp.maximum(h, 0.0).astype(x_ref.dtype)          # bf16 back onto the MXU
    acc_ref[...] += lax.dot_general(h, w2_ref[...], (((1,), (1,)), ((), ())),
                                    preferred_element_type=jnp.float32)

    @pl.when(k == pl.num_programs(1) - 1)
    def _():
        o_ref[...] = _layernorm_f32(acc_ref[...], g_ref[...], beta_ref[...],
                                    eps).astype(o_ref.dtype)


def ffn_add_ln(x, w1, b1, w2, b2, g, beta, *, eps=1e-5, row_tile=512, dff_tile=1024):
    N, d = x.shape
    dff = w1.shape[0]
    tm = _row_tile(N, row_tile)
    tf = _reduce_tile(dff, dff_tile)      # bounded weight residency per grid step
    return pl.pallas_call(
        functools.partial(_ffn_add_ln_kernel, eps=eps),
        out_shape=jax.ShapeDtypeStruct((N, d), x.dtype),
        grid=(pl.cdiv(N, tm), dff // tf),
        in_specs=[pl.BlockSpec((tm, d), lambda i, k: (i, 0)),
                  pl.BlockSpec((tf, d), lambda i, k: (k, 0)),
                  pl.BlockSpec((1, tf), lambda i, k: (0, k)),
                  pl.BlockSpec((d, tf), lambda i, k: (0, k)),
                  pl.BlockSpec((1, d), lambda i, k: (0, 0)),
                  pl.BlockSpec((1, d), lambda i, k: (0, 0)),
                  pl.BlockSpec((1, d), lambda i, k: (0, 0))],
        out_specs=pl.BlockSpec((tm, d), lambda i, k: (i, 0)),
        scratch_shapes=[pltpu.VMEM((tm, d), jnp.float32)],
        compiler_params=_cparams(2, last_arbitrary=True),
    )(x, w1, b1.reshape(1, dff), w2, b2.reshape(1, d),
      g.reshape(1, d), beta.reshape(1, d))


def _mha_kernel(*refs, heads, dh, k_off, v_off, scale, has_mask, split_kv):
    # refs: [mask?], kpm, q, k (or fused kv), [v], out
    idx = 0
    mask_ref = None
    if has_mask:
        mask_ref = refs[idx]; idx += 1
    kpm_ref = refs[idx]; idx += 1
    q_ref = refs[idx]; idx += 1
    k_ref = refs[idx]; idx += 1
    if split_kv:
        v_ref = refs[idx]; idx += 1
    else:
        v_ref = k_ref
    o_ref = refs[idx]

    # additive mask built in-kernel: (1,S) key-padding row (+ (tq,S) attn mask)
    m = kpm_ref[0]                                   # (1, S) f32
    if has_mask:
        m = mask_ref[...] + m                        # (tq, S) f32

    for h in range(heads):                           # per-head, stored directly
        qs = slice(h * dh, (h + 1) * dh)
        q = q_ref[0, :, qs]                                            # (tq, dh) bf16
        k = k_ref[0, :, k_off + h * dh: k_off + (h + 1) * dh]          # (S,  dh) bf16
        v = v_ref[0, :, v_off + h * dh: v_off + (h + 1) * dh]          # (S,  dh) bf16
        s = lax.dot_general(q, k, (((1,), (1,)), ((), ())),
                            preferred_element_type=jnp.float32) * scale + m
        s = s - jnp.max(s, axis=-1, keepdims=True)                     # f32 stats
        p = jnp.exp(s)
        denom = jnp.sum(p, axis=-1, keepdims=True)
        if _APPROX_RECIP:
            inv = pl.reciprocal(denom, approx=True)
        else:
            inv = 1.0 / denom
        o = lax.dot_general(p.astype(v.dtype), v, (((1,), (0,)), ((), ())),
                            preferred_element_type=jnp.float32) * inv
        o_ref[0, :, qs] = o.astype(o_ref.dtype)      # no concatenate, per-head store


def attention(q_src, kv_src, kpm_add, attn_mask, *, nhead, d_model, self_attn,
              tq_target=256):
    """q_src: (B,T,Dq) holding Q in its first d_model columns (Dq = 3d for fused
    self-attn QKV, d for cross-attn Q). kv_src: (B,S,Dkv) holding K,V slabs.
    kpm_add: (B,1,S) additive f32. attn_mask: (T,T) additive f32 or None."""
    B, T, Dq = q_src.shape
    S, Dkv = kv_src.shape[1], kv_src.shape[2]
    dh = d_model // nhead
    scale = 1.0 / math.sqrt(dh)
    has_mask = attn_mask is not None
    tq = _row_tile(T, tq_target)

    fold_heads = (dh % 128 == 0)         # lane-dense per-head blocks when possible
    Hg = nhead if fold_heads else 1
    heads = 1 if fold_heads else nhead
    grid = (B, Hg, pl.cdiv(T, tq))

    in_specs, inputs = [], []
    if has_mask:
        in_specs.append(pl.BlockSpec((tq, S), lambda b, h, it: (it, 0)))
        inputs.append(attn_mask)
    in_specs.append(pl.BlockSpec((1, 1, S), lambda b, h, it: (b, 0, 0)))
    inputs.append(kpm_add)

    if fold_heads:
        # carve Q/K/V head slabs straight from the fused projections via block
        # indices on the last dim (contracting dim fed to the MXU is >= 128).
        k_blk = nhead if self_attn else 0
        v_blk = 2 * nhead if self_attn else nhead
        in_specs += [
            pl.BlockSpec((1, tq, dh), lambda b, h, it: (b, it, h)),
            pl.BlockSpec((1, S, dh), lambda b, h, it: (b, 0, k_blk + h)),
            pl.BlockSpec((1, S, dh), lambda b, h, it: (b, 0, v_blk + h)),
        ]
        inputs += [q_src, kv_src, kv_src]
        o_spec = pl.BlockSpec((1, tq, dh), lambda b, h, it: (b, it, h))
        k_off = v_off = 0
        split_kv = True
    else:
        # small head_dim: one DMA of the fused block, static in-kernel slices.
        in_specs += [
            pl.BlockSpec((1, tq, Dq), lambda b, h, it: (b, it, 0)),
            pl.BlockSpec((1, S, Dkv), lambda b, h, it: (b, 0, 0)),
        ]
        inputs += [q_src, kv_src]
        o_spec = pl.BlockSpec((1, tq, d_model), lambda b, h, it: (b, it, 0))
        k_off = d_model if self_attn else 0
        v_off = 2 * d_model if self_attn else d_model
        split_kv = False

    kernel = functools.partial(_mha_kernel, heads=heads, dh=dh, k_off=k_off,
                               v_off=v_off, scale=scale, has_mask=has_mask,
                               split_kv=split_kv)
    # TODO(synk): for very long S, add a KV ("arbitrary") grid axis with online
    # softmax (m/l/acc scratch) instead of holding the full (S, dh) K/V blocks.
    return pl.pallas_call(
        kernel,
        out_shape=jax.ShapeDtypeStruct((B, T, d_model), q_src.dtype),
        grid=grid,
        in_specs=in_specs,
        out_specs=o_spec,
        compiler_params=_cparams(3),
    )(*inputs)


def _readout_kernel(x_ref, e_ref, o_ref):
    o_ref[...] = lax.dot_general(x_ref[...], e_ref[...], (((1,), (1,)), ((), ())),
                                 preferred_element_type=jnp.float32
                                 ).astype(o_ref.dtype)


def readout(x, emb, *, row_tile=512, vocab_tile=512):
    # Tied, bias-free readout: logits = x @ emb^T. cdiv grids over rows/vocab;
    # no per-call embedding pad and no logits slice (only the ragged last vocab
    # tile uses masked stores).
    N, d = x.shape
    V = emb.shape[0]
    tm = _row_tile(N, row_tile)
    tv = _vocab_tile(V, vocab_tile)
    return pl.pallas_call(
        _readout_kernel,
        out_shape=jax.ShapeDtypeStruct((N, V), jnp.float32),
        grid=(pl.cdiv(N, tm), pl.cdiv(V, tv)),
        in_specs=[pl.BlockSpec((tm, d), lambda i, j: (i, 0)),
                  pl.BlockSpec((tv, d), lambda i, j: (j, 0))],
        out_specs=pl.BlockSpec((tm, tv), lambda i, j: (i, j)),
        compiler_params=_cparams(2),
    )(x, emb)


# --------------------------- model (glue in JAX) ----------------------------

def decoder_layer(x, memory, lp, nhead, tgt_mask, tgt_kpm_add, mem_kpm_add):
    # post-norm TransformerDecoderLayer (PyTorch default, activation=relu)
    B, T, d = x.shape
    S = memory.shape[1]

    # --- self-attention: fused QKV projection; no jnp.split (BlockSpec/in-kernel carve)
    sa = lp["self_attn"]
    qkv = linear(x.reshape(B * T, d), sa["in_proj_w"],
                 sa["in_proj_b"]).reshape(B, T, 3 * d)
    att = attention(qkv, qkv, tgt_kpm_add, tgt_mask,
                    nhead=nhead, d_model=d, self_attn=True)
    x = proj_add_ln(att.reshape(B * T, d), x.reshape(B * T, d),
                    sa["out_w"], sa["out_b"],
                    lp["norm1_g"], lp["norm1_b"]).reshape(B, T, d)

    # --- cross-attention: Q from x, fused KV from memory; no jnp.split
    ca = lp["cross_attn"]
    q = linear(x.reshape(B * T, d), ca["q_w"], ca["q_b"]).reshape(B, T, d)
    kv = linear(memory.reshape(B * S, d), ca["kv_w"],
                ca["kv_b"]).reshape(B, S, 2 * d)
    att = attention(q, kv, mem_kpm_add, None,
                    nhead=nhead, d_model=d, self_attn=False)
    x = proj_add_ln(att.reshape(B * T, d), x.reshape(B * T, d),
                    ca["out_w"], ca["out_b"],
                    lp["norm2_g"], lp["norm2_b"]).reshape(B, T, d)

    # --- FFN + residual + LayerNorm (dim_ff tiled as reduction axis)
    x = ffn_add_ln(x.reshape(B * T, d), lp["ff_w1"], lp["ff_b1"],
                   lp["ff_w2"], lp["ff_b2"],
                   lp["norm3_g"], lp["norm3_b"]).reshape(B, T, d)
    return x


def transformer_decoder_forward(params, tgt, tgt_mask, tgt_kpm,
                                memory, mem_kpm, *, nhead):
    B, T = tgt.shape
    S = memory.shape[1]
    d = params["emb"].shape[1]

    # Embeddings: lut(x) / sqrt(d_model) + positional encoding
    # TODO(synk): embedding gather kept in plain JAX (glue); dropout = identity (eval).
    x = (jnp.take(params["emb"], tgt, axis=0).astype(jnp.float32) / math.sqrt(d)
         + params["pe"][:T][None]).astype(_ACT_DTYPE)
    memory = memory.astype(_ACT_DTYPE)

    # Tiny additive key-padding rows (B,1,S); masks combined *inside* the kernel.
    tgt_mask = tgt_mask.astype(jnp.float32)                              # (T,T)
    tgt_kpm_add = jnp.where(tgt_kpm, _NEG, 0.0).astype(jnp.float32).reshape(B, 1, T)
    mem_kpm_add = jnp.where(mem_kpm, _NEG, 0.0).astype(jnp.float32).reshape(B, 1, S)

    for lp in params["layers"]:
        x = decoder_layer(x, memory, lp, nhead, tgt_mask, tgt_kpm_add, mem_kpm_add)

    xf = layernorm(x.reshape(B * T, d),
                   params["final_norm_g"], params["final_norm_b"])

    # tied readout: logits = x @ emb^T   (out_proj.weight = lut.weight)
    logits = readout(xf, params["emb"]).reshape(B, T, -1)
    return logits


# ----------------------------- initialization -------------------------------

def make_pe(max_len, d_model):
    position = jnp.arange(0.0, max_len)[:, None]
    div_term = jnp.exp(jnp.arange(0.0, d_model, 2) * (-(math.log(10000.0) / d_model)))
    pe = jnp.zeros((max_len, d_model), jnp.float32)
    pe = pe.at[:, 0::2].set(jnp.sin(position * div_term))
    pe = pe.at[:, 1::2].set(jnp.cos(position * div_term))
    return pe


def init_params(key, vocab, d_model, nhead, nlayer, dim_ff, max_len=512):
    keys = jax.random.split(key, 1 + nlayer * 6)
    kit = iter(keys)
    std = 0.02

    def w(k, shape):  # matmul weights stored in bf16 (MXU inputs / HBM traffic)
        return (std * jax.random.normal(k, shape)).astype(_ACT_DTYPE)

    params = {
        "emb": w(next(kit), (vocab, d_model)),
        "pe": make_pe(max_len, d_model),
        "final_norm_g": jnp.ones((d_model,), jnp.float32),
        "final_norm_b": jnp.zeros((d_model,), jnp.float32),
        "layers": [],
    }
    for _ in range(nlayer):
        in_w = w(next(kit), (3 * d_model, d_model))       # cross-attn in_proj,
        lp = {                                            # pre-split at init
            "self_attn": {
                "in_proj_w": w(next(kit), (3 * d_model, d_model)),
                "in_proj_b": jnp.zeros((3 * d_model,), jnp.float32),
                "out_w": w(next(kit), (d_model, d_model)),
                "out_b": jnp.zeros((d_model,), jnp.float32),
            },
            "cross_attn": {
                "q_w": in_w[:d_model],
                "q_b": jnp.zeros((d_model,), jnp.float32),
                "kv_w": in_w[d_model:],
                "kv_b": jnp.zeros((2 * d_model,), jnp.float32),
                "out_w": w(next(kit), (d_model, d_model)),
                "out_b": jnp.zeros((d_model,), jnp.float32),
            },
            "ff_w1": w(next(kit), (dim_ff, d_model)),
            "ff_b1": jnp.zeros((dim_ff,), jnp.float32),
            "ff_w2": w(next(kit), (d_model, dim_ff)),
            "ff_b2": jnp.zeros((d_model,), jnp.float32),
            "norm1_g": jnp.ones((d_model,), jnp.float32),
            "norm1_b": jnp.zeros((d_model,), jnp.float32),
            "norm2_g": jnp.ones((d_model,), jnp.float32),
            "norm2_b": jnp.zeros((d_model,), jnp.float32),
            "norm3_g": jnp.ones((d_model,), jnp.float32),
            "norm3_b": jnp.zeros((d_model,), jnp.float32),
        }
        params["layers"].append(lp)
    return params


# --------------------------------- main --------------------------------------

if __name__ == "__main__":
    B, T, S = 2, 8, 8
    vocab, d_model, nhead, nlayer, dim_ff = 50, 32, 4, 2, 64

    key = jax.random.PRNGKey(0)
    kp, kt, km = jax.random.split(key, 3)

    params = init_params(kp, vocab, d_model, nhead, nlayer, dim_ff)

    tgt = jax.random.randint(kt, (B, T), 0, vocab, dtype=jnp.int32)
    memory = (0.1 * jax.random.normal(km, (B, S, d_model))).astype(jnp.float32)

    # causal additive mask (0 on/below diagonal, large-negative above)
    causal = jnp.where(jnp.triu(jnp.ones((T, T), bool), k=1), _NEG, 0.0).astype(jnp.float32)
    # key padding masks: True = ignore
    tgt_kpm = jnp.zeros((B, T), bool).at[1, T - 1].set(True)
    mem_kpm = jnp.zeros((B, S), bool).at[0, S - 2:].set(True)

    fwd = jax.jit(functools.partial(transformer_decoder_forward, nhead=nhead))
    logits = fwd(params, tgt, causal, tgt_kpm, memory, mem_kpm)
    logits = jax.block_until_ready(logits)

    assert logits.shape == (B, T, vocab), logits.shape
    assert bool(jnp.all(jnp.isfinite(logits)))
    print("KERNEL_OK")
</pallas_src>

<mosaic_0001>
module attributes {stable_mosaic.version = 11 : i64} {
  func.func @_linear_kernel(%arg0: i32, %arg1: memref<16x32xbf16, #tpu.memory_space<vmem>>, %arg2: memref<96x32xbf16, #tpu.memory_space<vmem>>, %arg3: memref<1x96xf32, #tpu.memory_space<vmem>>, %arg4: memref<16x96xbf16, #tpu.memory_space<vmem>>) attributes {dimension_semantics = [#tpu.dimension_semantics<parallel>], iteration_bounds = array<i64: 1>, scalar_prefetch = 0 : i64, scratch_operands = 0 : i64, tpu.core_type = #tpu.core_type<tc>, window_params = [{transform_indices = @transform_0, window_bounds = array<i64: 16, 32>}, {pipeline_mode = #tpu.pipeline_mode<synchronous>, transform_indices = @transform_1, window_bounds = array<i64: 96, 32>}, {pipeline_mode = #tpu.pipeline_mode<synchronous>, transform_indices = @transform_2, window_bounds = array<i64: 1, 96>}, {transform_indices = @transform_3, window_bounds = array<i64: 16, 96>}]} {
    %c0 = arith.constant 0 : index
    %c0_0 = arith.constant 0 : index
    %0 = vector.load %arg1[%c0, %c0_0] : memref<16x32xbf16, #tpu.memory_space<vmem>>, vector<16x32xbf16>
    %c0_1 = arith.constant 0 : index
    %c0_2 = arith.constant 0 : index
    %1 = vector.load %arg2[%c0_1, %c0_2] : memref<96x32xbf16, #tpu.memory_space<vmem>>, vector<96x32xbf16>
    %cst = arith.constant dense<0.000000e+00> : vector<16x96xf32>
    %2 = tpu.matmul %0, %1, %cst {dimension_numbers = #tpu.dot_dimension_numbers<[1], [1], [0], [0], [0, 0, 1, 0], [], []>} : vector<16x32xbf16>, vector<96x32xbf16>, vector<16x96xf32> -> vector<16x96xf32>
    %c0_3 = arith.constant 0 : index
    %c0_4 = arith.constant 0 : index
    %3 = vector.load %arg3[%c0_3, %c0_4] : memref<1x96xf32, #tpu.memory_space<vmem>>, vector<1x96xf32>
    %4 = vector.broadcast %3 : vector<1x96xf32> to vector<16x96xf32>
    %5 = arith.addf %2, %4 : vector<16x96xf32>
    %6 = arith.truncf %5 : vector<16x96xf32> to vector<16x96xbf16>
    %c0_5 = arith.constant 0 : index
    %c0_6 = arith.constant 0 : index
    %7 = vector.load %arg4[%c0_5, %c0_6] : memref<16x96xbf16, #tpu.memory_space<vmem>>, vector<16x96xbf16>
    tpu.vector_store %arg4[%c0_5, %c0_6], %6 {strides = array<i32>} : memref<16x96xbf16, #tpu.memory_space<vmem>>, vector<16x96xbf16>,
    return
  }
  func.func @transform_0(%arg0: i32) -> (i32, i32) {
    %c0_i32 = arith.constant 0 : i32
    %c0_i32_0 = arith.constant 0 : i32
    return %arg0, %c0_i32 : i32, i32
  }
  func.func @transform_1(%arg0: i32) -> (i32, i32) {
    %c0_i32 = arith.constant 0 : i32
    %c0_i32_0 = arith.constant 0 : i32
    %c0_i32_1 = arith.constant 0 : i32
    return %c0_i32, %c0_i32_0 : i32, i32
  }
  func.func @transform_2(%arg0: i32) -> (i32, i32) {
    %c0_i32 = arith.constant 0 : i32
    %c0_i32_0 = arith.constant 0 : i32
    %c0_i32_1 = arith.constant 0 : i32
    return %c0_i32, %c0_i32_0 : i32, i32
  }
  func.func @transform_3(%arg0: i32) -> (i32, i32) {
    %c0_i32 = arith.constant 0 : i32
    %c0_i32_0 = arith.constant 0 : i32
    return %arg0, %c0_i32 : i32, i32
  }
}

module attributes {stable_mosaic.version = 11 : i64} {
  func.func @_linear_kernel(%arg0: i32, %arg1: memref<16x32xbf16, #tpu.memory_space<vmem>>, %arg2: memref<32x32xbf16, #tpu.memory_space<vmem>>, %arg3: memref<1x32xf32, #tpu.memory_space<vmem>>, %arg4: memref<16x32xbf16, #tpu.memory_space<vmem>>) attributes {dimension_semantics = [#tpu.dimension_semantics<parallel>], iteration_bounds = array<i64: 1>, scalar_prefetch = 0 : i64, scratch_operands = 0 : i64, tpu.core_type = #tpu.core_type<tc>, window_params = [{transform_indices = @transform_0, window_bounds = array<i64: 16, 32>}, {pipeline_mode = #tpu.pipeline_mode<synchronous>, transform_indices = @transform_1, window_bounds = array<i64: 32, 32>}, {pipeline_mode = #tpu.pipeline_mode<synchronous>, transform_indices = @transform_2, window_bounds = array<i64: 1, 32>}, {transform_indices = @transform_3, window_bounds = array<i64: 16, 32>}]} {
    %c0 = arith.constant 0 : index
    %c0_0 = arith.constant 0 : index
    %0 = vector.load %arg1[%c0, %c0_0] : memref<16x32xbf16, #tpu.memory_space<vmem>>, vector<16x32xbf16>
    %c0_1 = arith.constant 0 : index
    %c0_2 = arith.constant 0 : index
    %1 = vector.load %arg2[%c0_1, %c0_2] : memref<32x32xbf16, #tpu.memory_space<vmem>>, vector<32x32xbf16>
    %cst = arith.constant dense<0.000000e+00> : vector<16x32xf32>
    %2 = tpu.matmul %0, %1, %cst {dimension_numbers = #tpu.dot_dimension_numbers<[1], [1], [0], [0], [0, 0, 1, 0], [], []>} : vector<16x32xbf16>, vector<32x32xbf16>, vector<16x32xf32> -> vector<16x32xf32>
    %c0_3 = arith.constant 0 : index
    %c0_4 = arith.constant 0 : index
    %3 = vector.load %arg3[%c0_3, %c0_4] : memref<1x32xf32, #tpu.memory_space<vmem>>, vector<1x32xf32>
    %4 = vector.broadcast %3 : vector<1x32xf32> to vector<16x32xf32>
    %5 = arith.addf %2, %4 : vector<16x32xf32>
    %6 = arith.truncf %5 : vector<16x32xf32> to vector<16x32xbf16>
    %c0_5 = arith.constant 0 : index
    %c0_6 = arith.constant 0 : index
    %7 = vector.load %arg4[%c0_5, %c0_6] : memref<16x32xbf16, #tpu.memory_space<vmem>>, vector<16x32xbf16>
    tpu.vector_store %arg4[%c0_5, %c0_6], %6 {strides = array<i32>} : memref<16x32xbf16, #tpu.memory_space<vmem>>, vector<16x32xbf16>,
    return
  }
  func.func @transform_0(%arg0: i32) -> (i32, i32) {
    %c0_i32 = arith.constant 0 : i32
    %c0_i32_0 = arith.constant 0 : i32
    return %arg0, %c0_i32 : i32, i32
  }
  func.func @transform_1(%arg0: i32) -> (i32, i32) {
    %c0_i32 = arith.constant 0 : i32
    %c0_i32_0 = arith.constant 0 : i32
    %c0_i32_1 = arith.constant 0 : i32
    return %c0_i32, %c0_i32_0 : i32, i32
  }
  func.func @transform_2(%arg0: i32) -> (i32, i32) {
    %c0_i32 = arith.constant 0 : i32
    %c0_i32_0 = arith.constant 0 : i32
    %c0_i32_1 = arith.constant 0 : i32
    return %c0_i32, %c0_i32_0 : i32, i32
  }
  func.func @transform_3(%arg0: i32) -> (i32, i32) {
    %c0_i32 = arith.constant 0 : i32
    %c0_i32_0 = arith.constant 0 : i32
    return %arg0, %c0_i32 : i32, i32
  }
}

module attributes {stable_mosaic.version = 11 : i64} {
  func.func @_mha_kernel(%arg0: i32, %arg1: i32, %arg2: i32, %arg3: memref<8x8xf32, #tpu.memory_space<vmem>>, %arg4: memref<1x1x8xf32, #tpu.memory_space<vmem>>, %arg5: memref<1x8x96xbf16, #tpu.memory_space<vmem>>, %arg6: memref<1x8x96xbf16, #tpu.memory_space<vmem>>, %arg7: memref<1x8x32xbf16, #tpu.memory_space<vmem>>) attributes {dimension_semantics = [#tpu.dimension_semantics<parallel>, #tpu.dimension_semantics<parallel>, #tpu.dimension_semantics<parallel>], iteration_bounds = array<i64: 2, 1, 1>, scalar_prefetch = 0 : i64, scratch_operands = 0 : i64, tpu.core_type = #tpu.core_type<tc>, window_params = [{transform_indices = @transform_0, window_bounds = array<i64: 8, 8>}, {transform_indices = @transform_1, window_bounds = array<i64: 1, 1, 8>}, {transform_indices = @transform_2, window_bounds = array<i64: 1, 8, 96>}, {transform_indices = @transform_3, window_bounds = array<i64: 1, 8, 96>}, {transform_indices = @transform_4, window_bounds = array<i64: 1, 8, 32>}]} {
    %c0 = arith.constant 0 : index
    %c0_0 = arith.constant 0 : index
    %c0_1 = arith.constant 0 : index
    %0 = vector.load %arg4[%c0, %c0_0, %c0_1] : memref<1x1x8xf32, #tpu.memory_space<vmem>>, vector<1x1x8xf32>
    %1 = vector.shape_cast %0 : vector<1x1x8xf32> to vector<1x8xf32>
    %c0_2 = arith.constant 0 : index
    %c0_3 = arith.constant 0 : index
    %2 = vector.load %arg3[%c0_2, %c0_3] : memref<8x8xf32, #tpu.memory_space<vmem>>, vector<8x8xf32>
    %3 = vector.broadcast %1 : vector<1x8xf32> to vector<8x8xf32>
    %4 = arith.addf %2, %3 : vector<8x8xf32>
    %c0_4 = arith.constant 0 : index
    %c0_5 = arith.constant 0 : index
    %c0_6 = arith.constant 0 : index
    %5 = vector.load %arg5[%c0_4, %c0_5, %c0_6] : memref<1x8x96xbf16, #tpu.memory_space<vmem>>, vector<1x8x8xbf16>
    %6 = vector.shape_cast %5 : vector<1x8x8xbf16> to vector<8x8xbf16>
    %c0_7 = arith.constant 0 : index
    %c0_8 = arith.constant 0 : index
    %c32 = arith.constant 32 : index
    %7 = vector.load %arg6[%c0_7, %c0_8, %c32] : memref<1x8x96xbf16, #tpu.memory_space<vmem>>, vector<1x8x8xbf16>
    %8 = vector.shape_cast %7 : vector<1x8x8xbf16> to vector<8x8xbf16>
    %c0_9 = arith.constant 0 : index
    %c0_10 = arith.constant 0 : index
    %c64 = arith.constant 64 : index
    %9 = vector.load %arg6[%c0_9, %c0_10, %c64] : memref<1x8x96xbf16, #tpu.memory_space<vmem>>, vector<1x8x8xbf16>
    %10 = vector.shape_cast %9 : vector<1x8x8xbf16> to vector<8x8xbf16>
    %cst = arith.constant dense<0.000000e+00> : vector<8x8xf32>
    %11 = tpu.matmul %6, %8, %cst {dimension_numbers = #tpu.dot_dimension_numbers<[1], [1], [0], [0], [0, 0, 1, 0], [], []>} : vector<8x8xbf16>, vector<8x8xbf16>, vector<8x8xf32> -> vector<8x8xf32>
    %cst_11 = arith.constant 0.353553385 : f32
    %12 = vector.broadcast %cst_11 : f32 to vector<8x8xf32>
    %13 = arith.mulf %11, %12 : vector<8x8xf32>
    %14 = arith.addf %13, %4 : vector<8x8xf32>
    %cst_12 = arith.constant dense<0xFF800000> : vector<8xf32>
    %15 = vector.multi_reduction <maximumf>, %14, %cst_12 [1] : vector<8x8xf32> to vector<8xf32>
    %16 = vector.shape_cast %15 : vector<8xf32> to vector<8x1xf32>
    %17 = vector.broadcast %16 : vector<8x1xf32> to vector<8x8xf32>
    %18 = arith.subf %14, %17 : vector<8x8xf32>
    %19 = math.exp %18 : vector<8x8xf32>
    %cst_13 = arith.constant dense<0.000000e+00> : vector<8xf32>
    %20 = vector.multi_reduction <add>, %19, %cst_13 [1] : vector<8x8xf32> to vector<8xf32>
    %21 = vector.shape_cast %20 : vector<8xf32> to vector<8x1xf32>
    %22 = tpu.reciprocal %21 {approx = true} : vector<8x1xf32> -> vector<8x1xf32>
    %23 = arith.truncf %19 : vector<8x8xf32> to vector<8x8xbf16>
    %cst_14 = arith.constant dense<0.000000e+00> : vector<8x8xf32>
    %24 = tpu.matmul %23, %10, %cst_14 {dimension_numbers = #tpu.dot_dimension_numbers<[1], [0], [0], [1], [0, 0, 1, 1], [], []>} : vector<8x8xbf16>, vector<8x8xbf16>, vector<8x8xf32> -> vector<8x8xf32>
    %25 = vector.broadcast %22 : vector<8x1xf32> to vector<8x8xf32>
    %26 = arith.mulf %24, %25 : vector<8x8xf32>
    %27 = arith.truncf %26 : vector<8x8xf32> to vector<8x8xbf16>
    %c0_15 = arith.constant 0 : index
    %c0_16 = arith.constant 0 : index
    %c0_17 = arith.constant 0 : index
    %28 = vector.load %arg7[%c0_15, %c0_16, %c0_17] : memref<1x8x32xbf16, #tpu.memory_space<vmem>>, vector<1x8x8xbf16>
    %29 = vector.shape_cast %28 : vector<1x8x8xbf16> to vector<8x8xbf16>
    %30 = vector.shape_cast %27 : vector<8x8xbf16> to vector<1x8x8xbf16>
    tpu.vector_store %arg7[%c0_15, %c0_16, %c0_17], %30 {strides = array<i32>} : memref<1x8x32xbf16, #tpu.memory_space<vmem>>, vector<1x8x8xbf16>,
    %c0_18 = arith.constant 0 : index
    %c0_19 = arith.constant 0 : index
    %c8 = arith.constant 8 : index
    %31 = vector.load %arg5[%c0_18, %c0_19, %c8] : memref<1x8x96xbf16, #tpu.memory_space<vmem>>, vector<1x8x8xbf16>
    %32 = vector.shape_cast %31 : vector<1x8x8xbf16> to vector<8x8xbf16>
    %c0_20 = arith.constant 0 : index
    %c0_21 = arith.constant 0 : index
    %c40 = arith.constant 40 : index
    %33 = vector.load %arg6[%c0_20, %c0_21, %c40] : memref<1x8x96xbf16, #tpu.memory_space<vmem>>, vector<1x8x8xbf16>
    %34 = vector.shape_cast %33 : vector<1x8x8xbf16> to vector<8x8xbf16>
    %c0_22 = arith.constant 0 : index
    %c0_23 = arith.constant 0 : index
    %c72 = arith.constant 72 : index
    %35 = vector.load %arg6[%c0_22, %c0_23, %c72] : memref<1x8x96xbf16, #tpu.memory_space<vmem>>, vector<1x8x8xbf16>
    %36 = vector.shape_cast %35 : vector<1x8x8xbf16> to vector<8x8xbf16>
    %cst_24 = arith.constant dense<0.000000e+00> : vector<8x8xf32>
    %37 = tpu.matmul %32, %34, %cst_24 {dimension_numbers = #tpu.dot_dimension_numbers<[1], [1], [0], [0], [0, 0, 1, 0], [], []>} : vector<8x8xbf16>, vector<8x8xbf16>, vector<8x8xf32> -> vector<8x8xf32>
    %cst_25 = arith.constant 0.353553385 : f32
    %38 = vector.broadcast %cst_25 : f32 to vector<8x8xf32>
    %39 = arith.mulf %37, %38 : vector<8x8xf32>
    %40 = arith.addf %39, %4 : vector<8x8xf32>
    %cst_26 = arith.constant dense<0xFF800000> : vector<8xf32>
    %41 = vector.multi_reduction <maximumf>, %40, %cst_26 [1] : vector<8x8xf32> to vector<8xf32>
    %42 = vector.shape_cast %41 : vector<8xf32> to vector<8x1xf32>
    %43 = vector.broadcast %42 : vector<8x1xf32> to vector<8x8xf32>
    %44 = arith.subf %40, %43 : vector<8x8xf32>
    %45 = math.exp %44 : vector<8x8xf32>
    %cst_27 = arith.constant dense<0.000000e+00> : vector<8xf32>
    %46 = vector.multi_reduction <add>, %45, %cst_27 [1] : vector<8x8xf32> to vector<8xf32>
    %47 = vector.shape_cast %46 : vector<8xf32> to vector<8x1xf32>
    %48 = tpu.reciprocal %47 {approx = true} : vector<8x1xf32> -> vector<8x1xf32>
    %49 = arith.truncf %45 : vector<8x8xf32> to vector<8x8xbf16>
    %cst_28 = arith.constant dense<0.000000e+00> : vector<8x8xf32>
    %50 = tpu.matmul %49, %36, %cst_28 {dimension_numbers = #tpu.dot_dimension_numbers<[1], [0], [0], [1], [0, 0, 1, 1], [], []>} : vector<8x8xbf16>, vector<8x8xbf16>, vector<8x8xf32> -> vector<8x8xf32>
    %51 = vector.broadcast %48 : vector<8x1xf32> to vector<8x8xf32>
    %52 = arith.mulf %50, %51 : vector<8x8xf32>
    %53 = arith.truncf %52 : vector<8x8xf32> to vector<8x8xbf16>
    %c0_29 = arith.constant 0 : index
    %c0_30 = arith.constant 0 : index
    %c8_31 = arith.constant 8 : index
    %54 = vector.load %arg7[%c0_29, %c0_30, %c8_31] : memref<1x8x32xbf16, #tpu.memory_space<vmem>>, vector<1x8x8xbf16>
    %55 = vector.shape_cast %54 : vector<1x8x8xbf16> to vector<8x8xbf16>
    %56 = vector.shape_cast %53 : vector<8x8xbf16> to vector<1x8x8xbf16>
    tpu.vector_store %arg7[%c0_29, %c0_30, %c8_31], %56 {strides = array<i32>} : memref<1x8x32xbf16, #tpu.memory_space<vmem>>, vector<1x8x8xbf16>,
    %c0_32 = arith.constant 0 : index
    %c0_33 = arith.constant 0 : index
    %c16 = arith.constant 16 : index
    %57 = vector.load %arg5[%c0_32, %c0_33, %c16] : memref<1x8x96xbf16, #tpu.memory_space<vmem>>, vector<1x8x8xbf16>
    %58 = vector.shape_cast %57 : vector<1x8x8xbf16> to vector<8x8xbf16>
    %c0_34 = arith.constant 0 : index
    %c0_35 = arith.constant 0 : index
    %c48 = arith.constant 48 : index
    %59 = vector.load %arg6[%c0_34, %c0_35, %c48] : memref<1x8x96xbf16, #tpu.memory_space<vmem>>, vector<1x8x8xbf16>
    %60 = vector.shape_cast %59 : vector<1x8x8xbf16> to vector<8x8xbf16>
    %c0_36 = arith.constant 0 : index
    %c0_37 = arith.constant 0 : index
    %c80 = arith.constant 80 : index
    %61 = vector.load %arg6[%c0_36, %c0_37, %c80] : memref<1x8x96xbf16, #tpu.memory_space<vmem>>, vector<1x8x8xbf16>
    %62 = vector.shape_cast %61 : vector<1x8x8xbf16> to vector<8x8xbf16>
    %cst_38 = arith.constant dense<0.000000e+00> : vector<8x8xf32>
    %63 = tpu.matmul %58, %60, %cst_38 {dimension_numbers = #tpu.dot_dimension_numbers<[1], [1], [0], [0], [0, 0, 1, 0], [], []>} : vector<8x8xbf16>, vector<8x8xbf16>, vector<8x8xf32> -> vector<8x8xf32>
    %cst_39 = arith.constant 0.353553385 : f32
    %64 = vector.broadcast %cst_39 : f32 to vector<8x8xf32>
    %65 = arith.mulf %63, %64 : vector<8x8xf32>
    %66 = arith.addf %65, %4 : vector<8x8xf32>
    %cst_40 = arith.constant dense<0xFF800000> : vector<8xf32>
    %67 = vector.multi_reduction <maximumf>, %66, %cst_40 [1] : vector<8x8xf32> to vector<8xf32>
    %68 = vector.shape_cast %67 : vector<8xf32> to vector<8x1xf32>
    %69 = vector.broadcast %68 : vector<8x1xf32> to vector<8x8xf32>
    %70 = arith.subf %66, %69 : vector<8x8xf32>
    %71 = math.exp %70 : vector<8x8xf32>
    %cst_41 = arith.constant dense<0.000000e+00> : vector<8xf32>
    %72 = vector.multi_reduction <add>, %71, %cst_41 [1] : vector<8x8xf32> to vector<8xf32>
    %73 = vector.shape_cast %72 : vector<8xf32> to vector<8x1xf32>
    %74 = tpu.reciprocal %73 {approx = true} : vector<8x1xf32> -> vector<8x1xf32>
    %75 = arith.truncf %71 : vector<8x8xf32> to vector<8x8xbf16>
    %cst_42 = arith.constant dense<0.000000e+00> : vector<8x8xf32>
    %76 = tpu.matmul %75, %62, %cst_42 {dimension_numbers = #tpu.dot_dimension_numbers<[1], [0], [0], [1], [0, 0, 1, 1], [], []>} : vector<8x8xbf16>, vector<8x8xbf16>, vector<8x8xf32> -> vector<8x8xf32>
    %77 = vector.broadcast %74 : vector<8x1xf32> to vector<8x8xf32>
    %78 = arith.mulf %76, %77 : vector<8x8xf32>
    %79 = arith.truncf %78 : vector<8x8xf32> to vector<8x8xbf16>
    %c0_43 = arith.constant 0 : index
    %c0_44 = arith.constant 0 : index
    %c16_45 = arith.constant 16 : index
    %80 = vector.load %arg7[%c0_43, %c0_44, %c16_45] : memref<1x8x32xbf16, #tpu.memory_space<vmem>>, vector<1x8x8xbf16>
    %81 = vector.shape_cast %80 : vector<1x8x8xbf16> to vector<8x8xbf16>
    %82 = vector.shape_cast %79 : vector<8x8xbf16> to vector<1x8x8xbf16>
    tpu.vector_store %arg7[%c0_43, %c0_44, %c16_45], %82 {strides = array<i32>} : memref<1x8x32xbf16, #tpu.memory_space<vmem>>, vector<1x8x8xbf16>,
    %c0_46 = arith.constant 0 : index
    %c0_47 = arith.constant 0 : index
    %c24 = arith.constant 24 : index
    %83 = vector.load %arg5[%c0_46, %c0_47, %c24] : memref<1x8x96xbf16, #tpu.memory_space<vmem>>, vector<1x8x8xbf16>
    %84 = vector.shape_cast %83 : vector<1x8x8xbf16> to vector<8x8xbf16>
    %c0_48 = arith.constant 0 : index
    %c0_49 = arith.constant 0 : index
    %c56 = arith.constant 56 : index
    %85 = vector.load %arg6[%c0_48, %c0_49, %c56] : memref<1x8x96xbf16, #tpu.memory_space<vmem>>, vector<1x8x8xbf16>
    %86 = vector.shape_cast %85 : vector<1x8x8xbf16> to vector<8x8xbf16>
    %c0_50 = arith.constant 0 : index
    %c0_51 = arith.constant 0 : index
    %c88 = arith.constant 88 : index
    %87 = vector.load %arg6[%c0_50, %c0_51, %c88] : memref<1x8x96xbf16, #tpu.memory_space<vmem>>, vector<1x8x8xbf16>
    %88 = vector.shape_cast %87 : vector<1x8x8xbf16> to vector<8x8xbf16>
    %cst_52 = arith.constant dense<0.000000e+00> : vector<8x8xf32>
    %89 = tpu.matmul %84, %86, %cst_52 {dimension_numbers = #tpu.dot_dimension_numbers<[1], [1], [0], [0], [0, 0, 1, 0], [], []>} : vector<8x8xbf16>, vector<8x8xbf16>, vector<8x8xf32> -> vector<8x8xf32>
    %cst_53 = arith.constant 0.353553385 : f32
    %90 = vector.broadcast %cst_53 : f32 to vector<8x8xf32>
    %91 = arith.mulf %89, %90 : vector<8x8xf32>
    %92 = arith.addf %91, %4 : vector<8x8xf32>
    %cst_54 = arith.constant dense<0xFF800000> : vector<8xf32>
    %93 = vector.multi_reduction <maximumf>, %92, %cst_54 [1] : vector<8x8xf32> to vector<8xf32>
    %94 = vector.shape_cast %93 : vector<8xf32> to vector<8x1xf32>
    %95 = vector.broadcast %94 : vector<8x1xf32> to vector<8x8xf32>
    %96 = arith.subf %92, %95 : vector<8x8xf32>
    %97 = math.exp %96 : vector<8x8xf32>
    %cst_55 = arith.constant dense<0.000000e+00> : vector<8xf32>
    %98 = vector.multi_reduction <add>, %97, %cst_55 [1] : vector<8x8xf32> to vector<8xf32>
    %99 = vector.shape_cast %98 : vector<8xf32> to vector<8x1xf32>
    %100 = tpu.reciprocal %99 {approx = true} : vector<8x1xf32> -> vector<8x1xf32>
    %101 = arith.truncf %97 : vector<8x8xf32> to vector<8x8xbf16>
    %cst_56 = arith.constant dense<0.000000e+00> : vector<8x8xf32>
    %102 = tpu.matmul %101, %88, %cst_56 {dimension_numbers = #tpu.dot_dimension_numbers<[1], [0], [0], [1], [0, 0, 1, 1], [], []>} : vector<8x8xbf16>, vector<8x8xbf16>, vector<8x8xf32> -> vector<8x8xf32>
    %103 = vector.broadcast %100 : vector<8x1xf32> to vector<8x8xf32>
    %104 = arith.mulf %102, %103 : vector<8x8xf32>
    %105 = arith.truncf %104 : vector<8x8xf32> to vector<8x8xbf16>
    %c0_57 = arith.constant 0 : index
    %c0_58 = arith.constant 0 : index
    %c24_59 = arith.constant 24 : index
    %106 = vector.load %arg7[%c0_57, %c0_58, %c24_59] : memref<1x8x32xbf16, #tpu.memory_space<vmem>>, vector<1x8x8xbf16>
    %107 = vector.shape_cast %106 : vector<1x8x8xbf16> to vector<8x8xbf16>
    %108 = vector.shape_cast %105 : vector<8x8xbf16> to vector<1x8x8xbf16>
    tpu.vector_store %arg7[%c0_57, %c0_58, %c24_59], %108 {strides = array<i32>} : memref<1x8x32xbf16, #tpu.memory_space<vmem>>, vector<1x8x8xbf16>,
    return
  }
  func.func @transform_0(%arg0: i32, %arg1: i32, %arg2: i32) -> (i32, i32) {
    %c0_i32 = arith.constant 0 : i32
    %c0_i32_0 = arith.constant 0 : i32
    return %arg2, %c0_i32 : i32, i32
  }
  func.func @transform_1(%arg0: i32, %arg1: i32, %arg2: i32) -> (i32, i32, i32) {
    %c0_i32 = arith.constant 0 : i32
    %c0_i32_0 = arith.constant 0 : i32
    %c0_i32_1 = arith.constant 0 : i32
    return %arg0, %c0_i32, %c0_i32_0 : i32, i32, i32
  }
  func.func @transform_2(%arg0: i32, %arg1: i32, %arg2: i32) -> (i32, i32, i32) {
    %c0_i32 = arith.constant 0 : i32
    %c0_i32_0 = arith.constant 0 : i32
    return %arg0, %arg2, %c0_i32 : i32, i32, i32
  }
  func.func @transform_3(%arg0: i32, %arg1: i32, %arg2: i32) -> (i32, i32, i32) {
    %c0_i32 = arith.constant 0 : i32
    %c0_i32_0 = arith.constant 0 : i32
    %c0_i32_1 = arith.constant 0 : i32
    return %arg0, %c0_i32, %c0_i32_0 : i32, i32, i32
  }
  func.func @transform_4(%arg0: i32, %arg1: i32, %arg2: i32) -> (i32, i32, i32) {
    %c0_i32 = arith.constant 0 : i32
    %c0_i32_0 = arith.constant 0 : i32
    return %arg0, %arg2, %c0_i32 : i32, i32, i32
  }
}

module attributes {stable_mosaic.version = 11 : i64} {
  func.func @_proj_add_ln_kernel(%arg0: i32, %arg1: memref<16x32xbf16, #tpu.memory_space<vmem>>, %arg2: memref<16x32xbf16, #tpu.memory_space<vmem>>, %arg3: memref<32x32xbf16, #tpu.memory_space<vmem>>, %arg4: memref<1x32xf32, #tpu.memory_space<vmem>>, %arg5: memref<1x32xf32, #tpu.memory_space<vmem>>, %arg6: memref<1x32xf32, #tpu.memory_space<vmem>>, %arg7: memref<16x32xbf16, #tpu.memory_space<vmem>>) attributes {dimension_semantics = [#tpu.dimension_semantics<parallel>], iteration_bounds = array<i64: 1>, scalar_prefetch = 0 : i64, scratch_operands = 0 : i64, tpu.core_type = #tpu.core_type<tc>, window_params = [{transform_indices = @transform_0, window_bounds = array<i64: 16, 32>}, {transform_indices = @transform_1, window_bounds = array<i64: 16, 32>}, {pipeline_mode = #tpu.pipeline_mode<synchronous>, transform_indices = @transform_2, window_bounds = array<i64: 32, 32>}, {pipeline_mode = #tpu.pipeline_mode<synchronous>, transform_indices = @transform_3, window_bounds = array<i64: 1, 32>}, {pipeline_mode = #tpu.pipeline_mode<synchronous>, transform_indices = @transform_4, window_bounds = array<i64: 1, 32>}, {pipeline_mode = #tpu.pipeline_mode<synchronous>, transform_indices = @transform_5, window_bounds = array<i64: 1, 32>}, {transform_indices = @transform_6, window_bounds = array<i64: 16, 32>}]} {
    %c0 = arith.constant 0 : index
    %c0_0 = arith.constant 0 : index
    %0 = vector.load %arg1[%c0, %c0_0] : memref<16x32xbf16, #tpu.memory_space<vmem>>, vector<16x32xbf16>
    %c0_1 = arith.constant 0 : index
    %c0_2 = arith.constant 0 : index
    %1 = vector.load %arg3[%c0_1, %c0_2] : memref<32x32xbf16, #tpu.memory_space<vmem>>, vector<32x32xbf16>
    %cst = arith.constant dense<0.000000e+00> : vector<16x32xf32>
    %2 = tpu.matmul %0, %1, %cst {dimension_numbers = #tpu.dot_dimension_numbers<[1], [1], [0], [0], [0, 0, 1, 0], [], []>} : vector<16x32xbf16>, vector<32x32xbf16>, vector<16x32xf32> -> vector<16x32xf32>
    %c0_3 = arith.constant 0 : index
    %c0_4 = arith.constant 0 : index
    %3 = vector.load %arg4[%c0_3, %c0_4] : memref<1x32xf32, #tpu.memory_space<vmem>>, vector<1x32xf32>
    %4 = vector.broadcast %3 : vector<1x32xf32> to vector<16x32xf32>
    %5 = arith.addf %2, %4 : vector<16x32xf32>
    %c0_5 = arith.constant 0 : index
    %c0_6 = arith.constant 0 : index
    %6 = vector.load %arg2[%c0_5, %c0_6] : memref<16x32xbf16, #tpu.memory_space<vmem>>, vector<16x32xbf16>
    %7 = arith.extf %6 : vector<16x32xbf16> to vector<16x32xf32>
    %8 = arith.addf %5, %7 : vector<16x32xf32>
    %c0_7 = arith.constant 0 : index
    %c0_8 = arith.constant 0 : index
    %9 = vector.load %arg5[%c0_7, %c0_8] : memref<1x32xf32, #tpu.memory_space<vmem>>, vector<1x32xf32>
    %c0_9 = arith.constant 0 : index
    %c0_10 = arith.constant 0 : index
    %10 = vector.load %arg6[%c0_9, %c0_10] : memref<1x32xf32, #tpu.memory_space<vmem>>, vector<1x32xf32>
    %cst_11 = arith.constant dense<0.000000e+00> : vector<16xf32>
    %11 = vector.multi_reduction <add>, %8, %cst_11 [1] : vector<16x32xf32> to vector<16xf32>
    %12 = vector.shape_cast %11 : vector<16xf32> to vector<16x1xf32>
    %cst_12 = arith.constant 3.200000e+01 : f32
    %13 = vector.broadcast %cst_12 : f32 to vector<16x1xf32>
    %14 = arith.divf %12, %13 : vector<16x1xf32>
    %15 = vector.broadcast %14 : vector<16x1xf32> to vector<16x32xf32>
    %16 = arith.subf %8, %15 : vector<16x32xf32>
    %17 = arith.mulf %16, %16 : vector<16x32xf32>
    %cst_13 = arith.constant dense<0.000000e+00> : vector<16xf32>
    %18 = vector.multi_reduction <add>, %17, %cst_13 [1] : vector<16x32xf32> to vector<16xf32>
    %19 = vector.shape_cast %18 : vector<16xf32> to vector<16x1xf32>
    %cst_14 = arith.constant 3.200000e+01 : f32
    %20 = vector.broadcast %cst_14 : f32 to vector<16x1xf32>
    %21 = arith.divf %19, %20 : vector<16x1xf32>
    %22 = vector.broadcast %14 : vector<16x1xf32> to vector<16x32xf32>
    %23 = arith.subf %8, %22 : vector<16x32xf32>
    %cst_15 = arith.constant 9.99999974E-6 : f32
    %24 = vector.broadcast %cst_15 : f32 to vector<16x1xf32>
    %25 = arith.addf %21, %24 : vector<16x1xf32>
    %26 = math.rsqrt %25 : vector<16x1xf32>
    %27 = vector.broadcast %26 : vector<16x1xf32> to vector<16x32xf32>
    %28 = arith.mulf %23, %27 : vector<16x32xf32>
    %29 = vector.broadcast %9 : vector<1x32xf32> to vector<16x32xf32>
    %30 = arith.mulf %28, %29 : vector<16x32xf32>
    %31 = vector.broadcast %10 : vector<1x32xf32> to vector<16x32xf32>
    %32 = arith.addf %30, %31 : vector<16x32xf32>
    %33 = arith.truncf %32 : vector<16x32xf32> to vector<16x32xbf16>
    %c0_16 = arith.constant 0 : index
    %c0_17 = arith.constant 0 : index
    %34 = vector.load %arg7[%c0_16, %c0_17] : memref<16x32xbf16, #tpu.memory_space<vmem>>, vector<16x32xbf16>
    tpu.vector_store %arg7[%c0_16, %c0_17], %33 {strides = array<i32>} : memref<16x32xbf16, #tpu.memory_space<vmem>>, vector<16x32xbf16>,
    return
  }
  func.func @transform_0(%arg0: i32) -> (i32, i32) {
    %c0_i32 = arith.constant 0 : i32
    %c0_i32_0 = arith.constant 0 : i32
    return %arg0, %c0_i32 : i32, i32
  }
  func.func @transform_1(%arg0: i32) -> (i32, i32) {
    %c0_i32 = arith.constant 0 : i32
    %c0_i32_0 = arith.constant 0 : i32
    return %arg0, %c0_i32 : i32, i32
  }
  func.func @transform_2(%arg0: i32) -> (i32, i32) {
    %c0_i32 = arith.constant 0 : i32
    %c0_i32_0 = arith.constant 0 : i32
    %c0_i32_1 = arith.constant 0 : i32
    return %c0_i32, %c0_i32_0 : i32, i32
  }
  func.func @transform_3(%arg0: i32) -> (i32, i32) {
    %c0_i32 = arith.constant 0 : i32
    %c0_i32_0 = arith.constant 0 : i32
    %c0_i32_1 = arith.constant 0 : i32
    return %c0_i32, %c0_i32_0 : i32, i32
  }
  func.func @transform_4(%arg0: i32) -> (i32, i32) {
    %c0_i32 = arith.constant 0 : i32
    %c0_i32_0 = arith.constant 0 : i32
    %c0_i32_1 = arith.constant 0 : i32
    return %c0_i32, %c0_i32_0 : i32, i32
  }
  func.func @transform_5(%arg0: i32) -> (i32, i32) {
    %c0_i32 = arith.constant 0 : i32
    %c0_i32_0 = arith.constant 0 : i32
    %c0_i32_1 = arith.constant 0 : i32
    return %c0_i32, %c0_i32_0 : i32, i32
  }
  func.func @transform_6(%arg0: i32) -> (i32, i32) {
    %c0_i32 = arith.constant 0 : i32
    %c0_i32_0 = arith.constant 0 : i32
    return %arg0, %c0_i32 : i32, i32
  }
}

module attributes {stable_mosaic.version = 11 : i64} {
  func.func @_linear_kernel(%arg0: i32, %arg1: memref<16x32xbf16, #tpu.memory_space<vmem>>, %arg2: memref<64x32xbf16, #tpu.memory_space<vmem>>, %arg3: memref<1x64xf32, #tpu.memory_space<vmem>>, %arg4: memref<16x64xbf16, #tpu.memory_space<vmem>>) attributes {dimension_semantics = [#tpu.dimension_semantics<parallel>], iteration_bounds = array<i64: 1>, scalar_prefetch = 0 : i64, scratch_operands = 0 : i64, tpu.core_type = #tpu.core_type<tc>, window_params = [{transform_indices = @transform_0, window_bounds = array<i64: 16, 32>}, {pipeline_mode = #tpu.pipeline_mode<synchronous>, transform_indices = @transform_1, window_bounds = array<i64: 64, 32>}, {pipeline_mode = #tpu.pipeline_mode<synchronous>, transform_indices = @transform_2, window_bounds = array<i64: 1, 64>}, {transform_indices = @transform_3, window_bounds = array<i64: 16, 64>}]} {
    %c0 = arith.constant 0 : index
    %c0_0 = arith.constant 0 : index
    %0 = vector.load %arg1[%c0, %c0_0] : memref<16x32xbf16, #tpu.memory_space<vmem>>, vector<16x32xbf16>
    %c0_1 = arith.constant 0 : index
    %c0_2 = arith.constant 0 : index
    %1 = vector.load %arg2[%c0_1, %c0_2] : memref<64x32xbf16, #tpu.memory_space<vmem>>, vector<64x32xbf16>
    %cst = arith.constant dense<0.000000e+00> : vector<16x64xf32>
    %2 = tpu.matmul %0, %1, %cst {dimension_numbers = #tpu.dot_dimension_numbers<[1], [1], [0], [0], [0, 0, 1, 0], [], []>} : vector<16x32xbf16>, vector<64x32xbf16>, vector<16x64xf32> -> vector<16x64xf32>
    %c0_3 = arith.constant 0 : index
    %c0_4 = arith.constant 0 : index
    %3 = vector.load %arg3[%c0_3, %c0_4] : memref<1x64xf32, #tpu.memory_space<vmem>>, vector<1x64xf32>
    %4 = vector.broadcast %3 : vector<1x64xf32> to vector<16x64xf32>
    %5 = arith.addf %2, %4 : vector<16x64xf32>
    %6 = arith.truncf %5 : vector<16x64xf32> to vector<16x64xbf16>
    %c0_5 = arith.constant 0 : index
    %c0_6 = arith.constant 0 : index
    %7 = vector.load %arg4[%c0_5, %c0_6] : memref<16x64xbf16, #tpu.memory_space<vmem>>, vector<16x64xbf16>
    tpu.vector_store %arg4[%c0_5, %c0_6], %6 {strides = array<i32>} : memref<16x64xbf16, #tpu.memory_space<vmem>>, vector<16x64xbf16>,
    return
  }
  func.func @transform_0(%arg0: i32) -> (i32, i32) {
    %c0_i32 = arith.constant 0 : i32
    %c0_i32_0 = arith.constant 0 : i32
    return %arg0, %c0_i32 : i32, i32
  }
  func.func @transform_1(%arg0: i32) -> (i32, i32) {
    %c0_i32 = arith.constant 0 : i32
    %c0_i32_0 = arith.constant 0 : i32
    %c0_i32_1 = arith.constant 0 : i32
    return %c0_i32, %c0_i32_0 : i32, i32
  }
  func.func @transform_2(%arg0: i32) -> (i32, i32) {
    %c0_i32 = arith.constant 0 : i32
    %c0_i32_0 = arith.constant 0 : i32
    %c0_i32_1 = arith.constant 0 : i32
    return %c0_i32, %c0_i32_0 : i32, i32
  }
  func.func @transform_3(%arg0: i32) -> (i32, i32) {
    %c0_i32 = arith.constant 0 : i32
    %c0_i32_0 = arith.constant 0 : i32
    return %arg0, %c0_i32 : i32, i32
  }
}

module attributes {stable_mosaic.version = 11 : i64} {
  func.func @_mha_kernel(%arg0: i32, %arg1: i32, %arg2: i32, %arg3: memref<1x1x8xf32, #tpu.memory_space<vmem>>, %arg4: memref<1x8x32xbf16, #tpu.memory_space<vmem>>, %arg5: memref<1x8x64xbf16, #tpu.memory_space<vmem>>, %arg6: memref<1x8x32xbf16, #tpu.memory_space<vmem>>) attributes {dimension_semantics = [#tpu.dimension_semantics<parallel>, #tpu.dimension_semantics<parallel>, #tpu.dimension_semantics<parallel>], iteration_bounds = array<i64: 2, 1, 1>, scalar_prefetch = 0 : i64, scratch_operands = 0 : i64, tpu.core_type = #tpu.core_type<tc>, window_params = [{transform_indices = @transform_0, window_bounds = array<i64: 1, 1, 8>}, {transform_indices = @transform_1, window_bounds = array<i64: 1, 8, 32>}, {transform_indices = @transform_2, window_bounds = array<i64: 1, 8, 64>}, {transform_indices = @transform_3, window_bounds = array<i64: 1, 8, 32>}]} {
    %c0 = arith.constant 0 : index
    %c0_0 = arith.constant 0 : index
    %c0_1 = arith.constant 0 : index
    %0 = vector.load %arg3[%c0, %c0_0, %c0_1] : memref<1x1x8xf32, #tpu.memory_space<vmem>>, vector<1x1x8xf32>
    %1 = vector.shape_cast %0 : vector<1x1x8xf32> to vector<1x8xf32>
    %c0_2 = arith.constant 0 : index
    %c0_3 = arith.constant 0 : index
    %c0_4 = arith.constant 0 : index
    %2 = vector.load %arg4[%c0_2, %c0_3, %c0_4] : memref<1x8x32xbf16, #tpu.memory_space<vmem>>, vector<1x8x8xbf16>
    %3 = vector.shape_cast %2 : vector<1x8x8xbf16> to vector<8x8xbf16>
    %c0_5 = arith.constant 0 : index
    %c0_6 = arith.constant 0 : index
    %c0_7 = arith.constant 0 : index
    %4 = vector.load %arg5[%c0_5, %c0_6, %c0_7] : memref<1x8x64xbf16, #tpu.memory_space<vmem>>, vector<1x8x8xbf16>
    %5 = vector.shape_cast %4 : vector<1x8x8xbf16> to vector<8x8xbf16>
    %c0_8 = arith.constant 0 : index
    %c0_9 = arith.constant 0 : index
    %c32 = arith.constant 32 : index
    %6 = vector.load %arg5[%c0_8, %c0_9, %c32] : memref<1x8x64xbf16, #tpu.memory_space<vmem>>, vector<1x8x8xbf16>
    %7 = vector.shape_cast %6 : vector<1x8x8xbf16> to vector<8x8xbf16>
    %cst = arith.constant dense<0.000000e+00> : vector<8x8xf32>
    %8 = tpu.matmul %3, %5, %cst {dimension_numbers = #tpu.dot_dimension_numbers<[1], [1], [0], [0], [0, 0, 1, 0], [], []>} : vector<8x8xbf16>, vector<8x8xbf16>, vector<8x8xf32> -> vector<8x8xf32>
    %cst_10 = arith.constant 0.353553385 : f32
    %9 = vector.broadcast %cst_10 : f32 to vector<8x8xf32>
    %10 = arith.mulf %8, %9 : vector<8x8xf32>
    %11 = vector.broadcast %1 : vector<1x8xf32> to vector<8x8xf32>
    %12 = arith.addf %10, %11 : vector<8x8xf32>
    %cst_11 = arith.constant dense<0xFF800000> : vector<8xf32>
    %13 = vector.multi_reduction <maximumf>, %12, %cst_11 [1] : vector<8x8xf32> to vector<8xf32>
    %14 = vector.shape_cast %13 : vector<8xf32> to vector<8x1xf32>
    %15 = vector.broadcast %14 : vector<8x1xf32> to vector<8x8xf32>
    %16 = arith.subf %12, %15 : vector<8x8xf32>
    %17 = math.exp %16 : vector<8x8xf32>
    %cst_12 = arith.constant dense<0.000000e+00> : vector<8xf32>
    %18 = vector.multi_reduction <add>, %17, %cst_12 [1] : vector<8x8xf32> to vector<8xf32>
    %19 = vector.shape_cast %18 : vector<8xf32> to vector<8x1xf32>
    %20 = tpu.reciprocal %19 {approx = true} : vector<8x1xf32> -> vector<8x1xf32>
    %21 = arith.truncf %17 : vector<8x8xf32> to vector<8x8xbf16>
    %cst_13 = arith.constant dense<0.000000e+00> : vector<8x8xf32>
    %22 = tpu.matmul %21, %7, %cst_13 {dimension_numbers = #tpu.dot_dimension_numbers<[1], [0], [0], [1], [0, 0, 1, 1], [], []>} : vector<8x8xbf16>, vector<8x8xbf16>, vector<8x8xf32> -> vector<8x8xf32>
    %23 = vector.broadcast %20 : vector<8x1xf32> to vector<8x8xf32>
    %24 = arith.mulf %22, %23 : vector<8x8xf32>
    %25 = arith.truncf %24 : vector<8x8xf32> to vector<8x8xbf16>
    %c0_14 = arith.constant 0 : index
    %c0_15 = arith.constant 0 : index
    %c0_16 = arith.constant 0 : index
    %26 = vector.load %arg6[%c0_14, %c0_15, %c0_16] : memref<1x8x32xbf16, #tpu.memory_space<vmem>>, vector<1x8x8xbf16>
    %27 = vector.shape_cast %26 : vector<1x8x8xbf16> to vector<8x8xbf16>
    %28 = vector.shape_cast %25 : vector<8x8xbf16> to vector<1x8x8xbf16>
    tpu.vector_store %arg6[%c0_14, %c0_15, %c0_16], %28 {strides = array<i32>} : memref<1x8x32xbf16, #tpu.memory_space<vmem>>, vector<1x8x8xbf16>,
    %c0_17 = arith.constant 0 : index
    %c0_18 = arith.constant 0 : index
    %c8 = arith.constant 8 : index
    %29 = vector.load %arg4[%c0_17, %c0_18, %c8] : memref<1x8x32xbf16, #tpu.memory_space<vmem>>, vector<1x8x8xbf16>
    %30 = vector.shape_cast %29 : vector<1x8x8xbf16> to vector<8x8xbf16>
    %c0_19 = arith.constant 0 : index
    %c0_20 = arith.constant 0 : index
    %c8_21 = arith.constant 8 : index
    %31 = vector.load %arg5[%c0_19, %c0_20, %c8_21] : memref<1x8x64xbf16, #tpu.memory_space<vmem>>, vector<1x8x8xbf16>
    %32 = vector.shape_cast %31 : vector<1x8x8xbf16> to vector<8x8xbf16>
    %c0_22 = arith.constant 0 : index
    %c0_23 = arith.constant 0 : index
    %c40 = arith.constant 40 : index
    %33 = vector.load %arg5[%c0_22, %c0_23, %c40] : memref<1x8x64xbf16, #tpu.memory_space<vmem>>, vector<1x8x8xbf16>
    %34 = vector.shape_cast %33 : vector<1x8x8xbf16> to vector<8x8xbf16>
    %cst_24 = arith.constant dense<0.000000e+00> : vector<8x8xf32>
    %35 = tpu.matmul %30, %32, %cst_24 {dimension_numbers = #tpu.dot_dimension_numbers<[1], [1], [0], [0], [0, 0, 1, 0], [], []>} : vector<8x8xbf16>, vector<8x8xbf16>, vector<8x8xf32> -> vector<8x8xf32>
    %cst_25 = arith.constant 0.353553385 : f32
    %36 = vector.broadcast %cst_25 : f32 to vector<8x8xf32>
    %37 = arith.mulf %35, %36 : vector<8x8xf32>
    %38 = vector.broadcast %1 : vector<1x8xf32> to vector<8x8xf32>
    %39 = arith.addf %37, %38 : vector<8x8xf32>
    %cst_26 = arith.constant dense<0xFF800000> : vector<8xf32>
    %40 = vector.multi_reduction <maximumf>, %39, %cst_26 [1] : vector<8x8xf32> to vector<8xf32>
    %41 = vector.shape_cast %40 : vector<8xf32> to vector<8x1xf32>
    %42 = vector.broadcast %41 : vector<8x1xf32> to vector<8x8xf32>
    %43 = arith.subf %39, %42 : vector<8x8xf32>
    %44 = math.exp %43 : vector<8x8xf32>
    %cst_27 = arith.constant dense<0.000000e+00> : vector<8xf32>
    %45 = vector.multi_reduction <add>, %44, %cst_27 [1] : vector<8x8xf32> to vector<8xf32>
    %46 = vector.shape_cast %45 : vector<8xf32> to vector<8x1xf32>
    %47 = tpu.reciprocal %46 {approx = true} : vector<8x1xf32> -> vector<8x1xf32>
    %48 = arith.truncf %44 : vector<8x8xf32> to vector<8x8xbf16>
    %cst_28 = arith.constant dense<0.000000e+00> : vector<8x8xf32>
    %49 = tpu.matmul %48, %34, %cst_28 {dimension_numbers = #tpu.dot_dimension_numbers<[1], [0], [0], [1], [0, 0, 1, 1], [], []>} : vector<8x8xbf16>, vector<8x8xbf16>, vector<8x8xf32> -> vector<8x8xf32>
    %50 = vector.broadcast %47 : vector<8x1xf32> to vector<8x8xf32>
    %51 = arith.mulf %49, %50 : vector<8x8xf32>
    %52 = arith.truncf %51 : vector<8x8xf32> to vector<8x8xbf16>
    %c0_29 = arith.constant 0 : index
    %c0_30 = arith.constant 0 : index
    %c8_31 = arith.constant 8 : index
    %53 = vector.load %arg6[%c0_29, %c0_30, %c8_31] : memref<1x8x32xbf16, #tpu.memory_space<vmem>>, vector<1x8x8xbf16>
    %54 = vector.shape_cast %53 : vector<1x8x8xbf16> to vector<8x8xbf16>
    %55 = vector.shape_cast %52 : vector<8x8xbf16> to vector<1x8x8xbf16>
    tpu.vector_store %arg6[%c0_29, %c0_30, %c8_31], %55 {strides = array<i32>} : memref<1x8x32xbf16, #tpu.memory_space<vmem>>, vector<1x8x8xbf16>,
    %c0_32 = arith.constant 0 : index
    %c0_33 = arith.constant 0 : index
    %c16 = arith.constant 16 : index
    %56 = vector.load %arg4[%c0_32, %c0_33, %c16] : memref<1x8x32xbf16, #tpu.memory_space<vmem>>, vector<1x8x8xbf16>
    %57 = vector.shape_cast %56 : vector<1x8x8xbf16> to vector<8x8xbf16>
    %c0_34 = arith.constant 0 : index
    %c0_35 = arith.constant 0 : index
    %c16_36 = arith.constant 16 : index
    %58 = vector.load %arg5[%c0_34, %c0_35, %c16_36] : memref<1x8x64xbf16, #tpu.memory_space<vmem>>, vector<1x8x8xbf16>
    %59 = vector.shape_cast %58 : vector<1x8x8xbf16> to vector<8x8xbf16>
    %c0_37 = arith.constant 0 : index
    %c0_38 = arith.constant 0 : index
    %c48 = arith.constant 48 : index
    %60 = vector.load %arg5[%c0_37, %c0_38, %c48] : memref<1x8x64xbf16, #tpu.memory_space<vmem>>, vector<1x8x8xbf16>
    %61 = vector.shape_cast %60 : vector<1x8x8xbf16> to vector<8x8xbf16>
    %cst_39 = arith.constant dense<0.000000e+00> : vector<8x8xf32>
    %62 = tpu.matmul %57, %59, %cst_39 {dimension_numbers = #tpu.dot_dimension_numbers<[1], [1], [0], [0], [0, 0, 1, 0], [], []>} : vector<8x8xbf16>, vector<8x8xbf16>, vector<8x8xf32> -> vector<8x8xf32>
    %cst_40 = arith.constant 0.353553385 : f32
    %63 = vector.broadcast %cst_40 : f32 to vector<8x8xf32>
    %64 = arith.mulf %62, %63 : vector<8x8xf32>
    %65 = vector.broadcast %1 : vector<1x8xf32> to vector<8x8xf32>
    %66 = arith.addf %64, %65 : vector<8x8xf32>
    %cst_41 = arith.constant dense<0xFF800000> : vector<8xf32>
    %67 = vector.multi_reduction <maximumf>, %66, %cst_41 [1] : vector<8x8xf32> to vector<8xf32>
    %68 = vector.shape_cast %67 : vector<8xf32> to vector<8x1xf32>
    %69 = vector.broadcast %68 : vector<8x1xf32> to vector<8x8xf32>
    %70 = arith.subf %66, %69 : vector<8x8xf32>
    %71 = math.exp %70 : vector<8x8xf32>
    %cst_42 = arith.constant dense<0.000000e+00> : vector<8xf32>
    %72 = vector.multi_reduction <add>, %71, %cst_42 [1] : vector<8x8xf32> to vector<8xf32>
    %73 = vector.shape_cast %72 : vector<8xf32> to vector<8x1xf32>
    %74 = tpu.reciprocal %73 {approx = true} : vector<8x1xf32> -> vector<8x1xf32>
    %75 = arith.truncf %71 : vector<8x8xf32> to vector<8x8xbf16>
    %cst_43 = arith.constant dense<0.000000e+00> : vector<8x8xf32>
    %76 = tpu.matmul %75, %61, %cst_43 {dimension_numbers = #tpu.dot_dimension_numbers<[1], [0], [0], [1], [0, 0, 1, 1], [], []>} : vector<8x8xbf16>, vector<8x8xbf16>, vector<8x8xf32> -> vector<8x8xf32>
    %77 = vector.broadcast %74 : vector<8x1xf32> to vector<8x8xf32>
    %78 = arith.mulf %76, %77 : vector<8x8xf32>
    %79 = arith.truncf %78 : vector<8x8xf32> to vector<8x8xbf16>
    %c0_44 = arith.constant 0 : index
    %c0_45 = arith.constant 0 : index
    %c16_46 = arith.constant 16 : index
    %80 = vector.load %arg6[%c0_44, %c0_45, %c16_46] : memref<1x8x32xbf16, #tpu.memory_space<vmem>>, vector<1x8x8xbf16>
    %81 = vector.shape_cast %80 : vector<1x8x8xbf16> to vector<8x8xbf16>
    %82 = vector.shape_cast %79 : vector<8x8xbf16> to vector<1x8x8xbf16>
    tpu.vector_store %arg6[%c0_44, %c0_45, %c16_46], %82 {strides = array<i32>} : memref<1x8x32xbf16, #tpu.memory_space<vmem>>, vector<1x8x8xbf16>,
    %c0_47 = arith.constant 0 : index
    %c0_48 = arith.constant 0 : index
    %c24 = arith.constant 24 : index
    %83 = vector.load %arg4[%c0_47, %c0_48, %c24] : memref<1x8x32xbf16, #tpu.memory_space<vmem>>, vector<1x8x8xbf16>
    %84 = vector.shape_cast %83 : vector<1x8x8xbf16> to vector<8x8xbf16>
    %c0_49 = arith.constant 0 : index
    %c0_50 = arith.constant 0 : index
    %c24_51 = arith.constant 24 : index
    %85 = vector.load %arg5[%c0_49, %c0_50, %c24_51] : memref<1x8x64xbf16, #tpu.memory_space<vmem>>, vector<1x8x8xbf16>
    %86 = vector.shape_cast %85 : vector<1x8x8xbf16> to vector<8x8xbf16>
    %c0_52 = arith.constant 0 : index
    %c0_53 = arith.constant 0 : index
    %c56 = arith.constant 56 : index
    %87 = vector.load %arg5[%c0_52, %c0_53, %c56] : memref<1x8x64xbf16, #tpu.memory_space<vmem>>, vector<1x8x8xbf16>
    %88 = vector.shape_cast %87 : vector<1x8x8xbf16> to vector<8x8xbf16>
    %cst_54 = arith.constant dense<0.000000e+00> : vector<8x8xf32>
    %89 = tpu.matmul %84, %86, %cst_54 {dimension_numbers = #tpu.dot_dimension_numbers<[1], [1], [0], [0], [0, 0, 1, 0], [], []>} : vector<8x8xbf16>, vector<8x8xbf16>, vector<8x8xf32> -> vector<8x8xf32>
    %cst_55 = arith.constant 0.353553385 : f32
    %90 = vector.broadcast %cst_55 : f32 to vector<8x8xf32>
    %91 = arith.mulf %89, %90 : vector<8x8xf32>
    %92 = vector.broadcast %1 : vector<1x8xf32> to vector<8x8xf32>
    %93 = arith.addf %91, %92 : vector<8x8xf32>
    %cst_56 = arith.constant dense<0xFF800000> : vector<8xf32>
    %94 = vector.multi_reduction <maximumf>, %93, %cst_56 [1] : vector<8x8xf32> to vector<8xf32>
    %95 = vector.shape_cast %94 : vector<8xf32> to vector<8x1xf32>
    %96 = vector.broadcast %95 : vector<8x1xf32> to vector<8x8xf32>
    %97 = arith.subf %93, %96 : vector<8x8xf32>
    %98 = math.exp %97 : vector<8x8xf32>
    %cst_57 = arith.constant dense<0.000000e+00> : vector<8xf32>
    %99 = vector.multi_reduction <add>, %98, %cst_57 [1] : vector<8x8xf32> to vector<8xf32>
    %100 = vector.shape_cast %99 : vector<8xf32> to vector<8x1xf32>
    %101 = tpu.reciprocal %100 {approx = true} : vector<8x1xf32> -> vector<8x1xf32>
    %102 = arith.truncf %98 : vector<8x8xf32> to vector<8x8xbf16>
    %cst_58 = arith.constant dense<0.000000e+00> : vector<8x8xf32>
    %103 = tpu.matmul %102, %88, %cst_58 {dimension_numbers = #tpu.dot_dimension_numbers<[1], [0], [0], [1], [0, 0, 1, 1], [], []>} : vector<8x8xbf16>, vector<8x8xbf16>, vector<8x8xf32> -> vector<8x8xf32>
    %104 = vector.broadcast %101 : vector<8x1xf32> to vector<8x8xf32>
    %105 = arith.mulf %103, %104 : vector<8x8xf32>
    %106 = arith.truncf %105 : vector<8x8xf32> to vector<8x8xbf16>
    %c0_59 = arith.constant 0 : index
    %c0_60 = arith.constant 0 : index
    %c24_61 = arith.constant 24 : index
    %107 = vector.load %arg6[%c0_59, %c0_60, %c24_61] : memref<1x8x32xbf16, #tpu.memory_space<vmem>>, vector<1x8x8xbf16>
    %108 = vector.shape_cast %107 : vector<1x8x8xbf16> to vector<8x8xbf16>
    %109 = vector.shape_cast %106 : vector<8x8xbf16> to vector<1x8x8xbf16>
    tpu.vector_store %arg6[%c0_59, %c0_60, %c24_61], %109 {strides = array<i32>} : memref<1x8x32xbf16, #tpu.memory_space<vmem>>, vector<1x8x8xbf16>,
    return
  }
  func.func @transform_0(%arg0: i32, %arg1: i32, %arg2: i32) -> (i32, i32, i32) {
    %c0_i32 = arith.constant 0 : i32
    %c0_i32_0 = arith.constant 0 : i32
    %c0_i32_1 = arith.constant 0 : i32
    return %arg0, %c0_i32, %c0_i32_0 : i32, i32, i32
  }
  func.func @transform_1(%arg0: i32, %arg1: i32, %arg2: i32) -> (i32, i32, i32) {
    %c0_i32 = arith.constant 0 : i32
    %c0_i32_0 = arith.constant 0 : i32
    return %arg0, %arg2, %c0_i32 : i32, i32, i32
  }
  func.func @transform_2(%arg0: i32, %arg1: i32, %arg2: i32) -> (i32, i32, i32) {
    %c0_i32 = arith.constant 0 : i32
    %c0_i32_0 = arith.constant 0 : i32
    %c0_i32_1 = arith.constant 0 : i32
    return %arg0, %c0_i32, %c0_i32_0 : i32, i32, i32
  }
  func.func @transform_3(%arg0: i32, %arg1: i32, %arg2: i32) -> (i32, i32, i32) {
    %c0_i32 = arith.constant 0 : i32
    %c0_i32_0 = arith.constant 0 : i32
    return %arg0, %arg2, %c0_i32 : i32, i32, i32
  }
}

module attributes {stable_mosaic.version = 11 : i64} {
  func.func @_ffn_add_ln_kernel(%arg0: i32, %arg1: i32, %arg2: memref<16x32xbf16, #tpu.memory_space<vmem>>, %arg3: memref<64x32xbf16, #tpu.memory_space<vmem>>, %arg4: memref<1x64xf32, #tpu.memory_space<vmem>>, %arg5: memref<32x64xbf16, #tpu.memory_space<vmem>>, %arg6: memref<1x32xf32, #tpu.memory_space<vmem>>, %arg7: memref<1x32xf32, #tpu.memory_space<vmem>>, %arg8: memref<1x32xf32, #tpu.memory_space<vmem>>, %arg9: memref<16x32xbf16, #tpu.memory_space<vmem>>, %arg10: memref<16x32xf32, #tpu.memory_space<vmem>>) attributes {dimension_semantics = [#tpu.dimension_semantics<parallel>, #tpu.dimension_semantics<arbitrary>], iteration_bounds = array<i64: 1, 1>, scalar_prefetch = 0 : i64, scratch_operands = 1 : i64, tpu.core_type = #tpu.core_type<tc>, window_params = [{transform_indices = @transform_0, window_bounds = array<i64: 16, 32>}, {transform_indices = @transform_1, window_bounds = array<i64: 64, 32>}, {transform_indices = @transform_2, window_bounds = array<i64: 1, 64>}, {transform_indices = @transform_3, window_bounds = array<i64: 32, 64>}, {pipeline_mode = #tpu.pipeline_mode<synchronous>, transform_indices = @transform_4, window_bounds = array<i64: 1, 32>}, {pipeline_mode = #tpu.pipeline_mode<synchronous>, transform_indices = @transform_5, window_bounds = array<i64: 1, 32>}, {pipeline_mode = #tpu.pipeline_mode<synchronous>, transform_indices = @transform_6, window_bounds = array<i64: 1, 32>}, {transform_indices = @transform_7, window_bounds = array<i64: 16, 32>}]} {
    %c0_i32 = arith.constant 0 : i32
    %0 = arith.cmpi eq, %arg1, %c0_i32 : i32
    %1 = arith.extui %0 : i1 to i32
    %c0_i32_0 = arith.constant 0 : i32
    %2 = arith.cmpi ne, %1, %c0_i32_0 : i32
    scf.if %2 {
      %c0_16 = arith.constant 0 : index
      %c0_17 = arith.constant 0 : index
      %20 = vector.load %arg2[%c0_16, %c0_17] : memref<16x32xbf16, #tpu.memory_space<vmem>>, vector<16x32xbf16>
      %21 = arith.extf %20 : vector<16x32xbf16> to vector<16x32xf32>
      %c0_18 = arith.constant 0 : index
      %c0_19 = arith.constant 0 : index
      %22 = vector.load %arg6[%c0_18, %c0_19] : memref<1x32xf32, #tpu.memory_space<vmem>>, vector<1x32xf32>
      %23 = vector.broadcast %22 : vector<1x32xf32> to vector<16x32xf32>
      %24 = arith.addf %21, %23 : vector<16x32xf32>
      %c0_20 = arith.constant 0 : index
      %c0_21 = arith.constant 0 : index
      %25 = vector.load %arg10[%c0_20, %c0_21] : memref<16x32xf32, #tpu.memory_space<vmem>>, vector<16x32xf32>
      tpu.vector_store %arg10[%c0_20, %c0_21], %24 {strides = array<i32>} : memref<16x32xf32, #tpu.memory_space<vmem>>, vector<16x32xf32>,
    } else {
    }
    %c0 = arith.constant 0 : index
    %c0_1 = arith.constant 0 : index
    %3 = vector.load %arg2[%c0, %c0_1] : memref<16x32xbf16, #tpu.memory_space<vmem>>, vector<16x32xbf16>
    %c0_2 = arith.constant 0 : index
    %c0_3 = arith.constant 0 : index
    %4 = vector.load %arg3[%c0_2, %c0_3] : memref<64x32xbf16, #tpu.memory_space<vmem>>, vector<64x32xbf16>
    %cst = arith.constant dense<0.000000e+00> : vector<16x64xf32>
    %5 = tpu.matmul %3, %4, %cst {dimension_numbers = #tpu.dot_dimension_numbers<[1], [1], [0], [0], [0, 0, 1, 0], [], []>} : vector<16x32xbf16>, vector<64x32xbf16>, vector<16x64xf32> -> vector<16x64xf32>
    %c0_4 = arith.constant 0 : index
    %c0_5 = arith.constant 0 : index
    %6 = vector.load %arg4[%c0_4, %c0_5] : memref<1x64xf32, #tpu.memory_space<vmem>>, vector<1x64xf32>
    %7 = vector.broadcast %6 : vector<1x64xf32> to vector<16x64xf32>
    %8 = arith.addf %5, %7 : vector<16x64xf32>
    %cst_6 = arith.constant 0.000000e+00 : f32
    %9 = vector.broadcast %cst_6 : f32 to vector<16x64xf32>
    %10 = arith.maximumf %8, %9 : vector<16x64xf32>
    %11 = arith.truncf %10 : vector<16x64xf32> to vector<16x64xbf16>
    %c0_7 = arith.constant 0 : index
    %c0_8 = arith.constant 0 : index
    %12 = vector.load %arg10[%c0_7, %c0_8] : memref<16x32xf32, #tpu.memory_space<vmem>>, vector<16x32xf32>
    %c0_9 = arith.constant 0 : index
    %c0_10 = arith.constant 0 : index
    %13 = vector.load %arg5[%c0_9, %c0_10] : memref<32x64xbf16, #tpu.memory_space<vmem>>, vector<32x64xbf16>
    %cst_11 = arith.constant dense<0.000000e+00> : vector<16x32xf32>
    %14 = tpu.matmul %11, %13, %cst_11 {dimension_numbers = #tpu.dot_dimension_numbers<[1], [1], [0], [0], [0, 0, 1, 0], [], []>} : vector<16x64xbf16>, vector<32x64xbf16>, vector<16x32xf32> -> vector<16x32xf32>
    %15 = arith.addf %12, %14 : vector<16x32xf32>
    %c0_12 = arith.constant 0 : index
    %c0_13 = arith.constant 0 : index
    %16 = vector.load %arg10[%c0_12, %c0_13] : memref<16x32xf32, #tpu.memory_space<vmem>>, vector<16x32xf32>
    tpu.vector_store %arg10[%c0_12, %c0_13], %15 {strides = array<i32>} : memref<16x32xf32, #tpu.memory_space<vmem>>, vector<16x32xf32>,
    %c0_i32_14 = arith.constant 0 : i32
    %17 = arith.cmpi eq, %arg1, %c0_i32_14 : i32
    %18 = arith.extui %17 : i1 to i32
    %c0_i32_15 = arith.constant 0 : i32
    %19 = arith.cmpi ne, %18, %c0_i32_15 : i32
    scf.if %19 {
      %c0_16 = arith.constant 0 : index
      %c0_17 = arith.constant 0 : index
      %20 = vector.load %arg10[%c0_16, %c0_17] : memref<16x32xf32, #tpu.memory_space<vmem>>, vector<16x32xf32>
      %c0_18 = arith.constant 0 : index
      %c0_19 = arith.constant 0 : index
      %21 = vector.load %arg7[%c0_18, %c0_19] : memref<1x32xf32, #tpu.memory_space<vmem>>, vector<1x32xf32>
      %c0_20 = arith.constant 0 : index
      %c0_21 = arith.constant 0 : index
      %22 = vector.load %arg8[%c0_20, %c0_21] : memref<1x32xf32, #tpu.memory_space<vmem>>, vector<1x32xf32>
      %cst_22 = arith.constant dense<0.000000e+00> : vector<16xf32>
      %23 = vector.multi_reduction <add>, %20, %cst_22 [1] : vector<16x32xf32> to vector<16xf32>
      %24 = vector.shape_cast %23 : vector<16xf32> to vector<16x1xf32>
      %cst_23 = arith.constant 3.200000e+01 : f32
      %25 = vector.broadcast %cst_23 : f32 to vector<16x1xf32>
      %26 = arith.divf %24, %25 : vector<16x1xf32>
      %27 = vector.broadcast %26 : vector<16x1xf32> to vector<16x32xf32>
      %28 = arith.subf %20, %27 : vector<16x32xf32>
      %29 = arith.mulf %28, %28 : vector<16x32xf32>
      %cst_24 = arith.constant dense<0.000000e+00> : vector<16xf32>
      %30 = vector.multi_reduction <add>, %29, %cst_24 [1] : vector<16x32xf32> to vector<16xf32>
      %31 = vector.shape_cast %30 : vector<16xf32> to vector<16x1xf32>
      %cst_25 = arith.constant 3.200000e+01 : f32
      %32 = vector.broadcast %cst_25 : f32 to vector<16x1xf32>
      %33 = arith.divf %31, %32 : vector<16x1xf32>
      %34 = vector.broadcast %26 : vector<16x1xf32> to vector<16x32xf32>
      %35 = arith.subf %20, %34 : vector<16x32xf32>
      %cst_26 = arith.constant 9.99999974E-6 : f32
      %36 = vector.broadcast %cst_26 : f32 to vector<16x1xf32>
      %37 = arith.addf %33, %36 : vector<16x1xf32>
      %38 = math.rsqrt %37 : vector<16x1xf32>
      %39 = vector.broadcast %38 : vector<16x1xf32> to vector<16x32xf32>
      %40 = arith.mulf %35, %39 : vector<16x32xf32>
      %41 = vector.broadcast %21 : vector<1x32xf32> to vector<16x32xf32>
      %42 = arith.mulf %40, %41 : vector<16x32xf32>
      %43 = vector.broadcast %22 : vector<1x32xf32> to vector<16x32xf32>
      %44 = arith.addf %42, %43 : vector<16x32xf32>
      %45 = arith.truncf %44 : vector<16x32xf32> to vector<16x32xbf16>
      %c0_27 = arith.constant 0 : index
      %c0_28 = arith.constant 0 : index
      %46 = vector.load %arg9[%c0_27, %c0_28] : memref<16x32xbf16, #tpu.memory_space<vmem>>, vector<16x32xbf16>
      tpu.vector_store %arg9[%c0_27, %c0_28], %45 {strides = array<i32>} : memref<16x32xbf16, #tpu.memory_space<vmem>>, vector<16x32xbf16>,
    } else {
    }
    return
  }
  func.func @transform_0(%arg0: i32, %arg1: i32) -> (i32, i32) {
    %c0_i32 = arith.constant 0 : i32
    %c0_i32_0 = arith.constant 0 : i32
    return %arg0, %c0_i32 : i32, i32
  }
  func.func @transform_1(%arg0: i32, %arg1: i32) -> (i32, i32) {
    %c0_i32 = arith.constant 0 : i32
    %c0_i32_0 = arith.constant 0 : i32
    return %arg1, %c0_i32 : i32, i32
  }
  func.func @transform_2(%arg0: i32, %arg1: i32) -> (i32, i32) {
    %c0_i32 = arith.constant 0 : i32
    %c0_i32_0 = arith.constant 0 : i32
    return %c0_i32, %arg1 : i32, i32
  }
  func.func @transform_3(%arg0: i32, %arg1: i32) -> (i32, i32) {
    %c0_i32 = arith.constant 0 : i32
    %c0_i32_0 = arith.constant 0 : i32
    return %c0_i32, %arg1 : i32, i32
  }
  func.func @transform_4(%arg0: i32, %arg1: i32) -> (i32, i32) {
    %c0_i32 = arith.constant 0 : i32
    %c0_i32_0 = arith.constant 0 : i32
    %c0_i32_1 = arith.constant 0 : i32
    return %c0_i32, %c0_i32_0 : i32, i32
  }
  func.func @transform_5(%arg0: i32, %arg1: i32) -> (i32, i32) {
    %c0_i32 = arith.constant 0 : i32
    %c0_i32_0 = arith.constant 0 : i32
    %c0_i32_1 = arith.constant 0 : i32
    return %c0_i32, %c0_i32_0 : i32, i32
  }
  func.func @transform_6(%arg0: i32, %arg1: i32) -> (i32, i32) {
    %c0_i32 = arith.constant 0 : i32
    %c0_i32_0 = arith.constant 0 : i32
    %c0_i32_1 = arith.constant 0 : i32
    return %c0_i32, %c0_i32_0 : i32, i32
  }
  func.func @transform_7(%arg0: i32, %arg1: i32) -> (i32, i32) {
    %c0_i32 = arith.constant 0 : i32
    %c0_i32_0 = arith.constant 0 : i32
    return %arg0, %c0_i32 : i32, i32
  }
}

module attributes {stable_mosaic.version = 11 : i64} {
  func.func @_layernorm_kernel(%arg0: i32, %arg1: memref<16x32xbf16, #tpu.memory_space<vmem>>, %arg2: memref<1x32xf32, #tpu.memory_space<vmem>>, %arg3: memref<1x32xf32, #tpu.memory_space<vmem>>, %arg4: memref<16x32xbf16, #tpu.memory_space<vmem>>) attributes {dimension_semantics = [#tpu.dimension_semantics<parallel>], iteration_bounds = array<i64: 1>, scalar_prefetch = 0 : i64, scratch_operands = 0 : i64, tpu.core_type = #tpu.core_type<tc>, window_params = [{transform_indices = @transform_0, window_bounds = array<i64: 16, 32>}, {pipeline_mode = #tpu.pipeline_mode<synchronous>, transform_indices = @transform_1, window_bounds = array<i64: 1, 32>}, {pipeline_mode = #tpu.pipeline_mode<synchronous>, transform_indices = @transform_2, window_bounds = array<i64: 1, 32>}, {transform_indices = @transform_3, window_bounds = array<i64: 16, 32>}]} {
    %c0 = arith.constant 0 : index
    %c0_0 = arith.constant 0 : index
    %0 = vector.load %arg1[%c0, %c0_0] : memref<16x32xbf16, #tpu.memory_space<vmem>>, vector<16x32xbf16>
    %1 = arith.extf %0 : vector<16x32xbf16> to vector<16x32xf32>
    %c0_1 = arith.constant 0 : index
    %c0_2 = arith.constant 0 : index
    %2 = vector.load %arg2[%c0_1, %c0_2] : memref<1x32xf32, #tpu.memory_space<vmem>>, vector<1x32xf32>
    %c0_3 = arith.constant 0 : index
    %c0_4 = arith.constant 0 : index
    %3 = vector.load %arg3[%c0_3, %c0_4] : memref<1x32xf32, #tpu.memory_space<vmem>>, vector<1x32xf32>
    %cst = arith.constant dense<0.000000e+00> : vector<16xf32>
    %4 = vector.multi_reduction <add>, %1, %cst [1] : vector<16x32xf32> to vector<16xf32>
    %5 = vector.shape_cast %4 : vector<16xf32> to vector<16x1xf32>
    %cst_5 = arith.constant 3.200000e+01 : f32
    %6 = vector.broadcast %cst_5 : f32 to vector<16x1xf32>
    %7 = arith.divf %5, %6 : vector<16x1xf32>
    %8 = vector.broadcast %7 : vector<16x1xf32> to vector<16x32xf32>
    %9 = arith.subf %1, %8 : vector<16x32xf32>
    %10 = arith.mulf %9, %9 : vector<16x32xf32>
    %cst_6 = arith.constant dense<0.000000e+00> : vector<16xf32>
    %11 = vector.multi_reduction <add>, %10, %cst_6 [1] : vector<16x32xf32> to vector<16xf32>
    %12 = vector.shape_cast %11 : vector<16xf32> to vector<16x1xf32>
    %cst_7 = arith.constant 3.200000e+01 : f32
    %13 = vector.broadcast %cst_7 : f32 to vector<16x1xf32>
    %14 = arith.divf %12, %13 : vector<16x1xf32>
    %15 = vector.broadcast %7 : vector<16x1xf32> to vector<16x32xf32>
    %16 = arith.subf %1, %15 : vector<16x32xf32>
    %cst_8 = arith.constant 9.99999974E-6 : f32
    %17 = vector.broadcast %cst_8 : f32 to vector<16x1xf32>
    %18 = arith.addf %14, %17 : vector<16x1xf32>
    %19 = math.rsqrt %18 : vector<16x1xf32>
    %20 = vector.broadcast %19 : vector<16x1xf32> to vector<16x32xf32>
    %21 = arith.mulf %16, %20 : vector<16x32xf32>
    %22 = vector.broadcast %2 : vector<1x32xf32> to vector<16x32xf32>
    %23 = arith.mulf %21, %22 : vector<16x32xf32>
    %24 = vector.broadcast %3 : vector<1x32xf32> to vector<16x32xf32>
    %25 = arith.addf %23, %24 : vector<16x32xf32>
    %26 = arith.truncf %25 : vector<16x32xf32> to vector<16x32xbf16>
    %c0_9 = arith.constant 0 : index
    %c0_10 = arith.constant 0 : index
    %27 = vector.load %arg4[%c0_9, %c0_10] : memref<16x32xbf16, #tpu.memory_space<vmem>>, vector<16x32xbf16>
    tpu.vector_store %arg4[%c0_9, %c0_10], %26 {strides = array<i32>} : memref<16x32xbf16, #tpu.memory_space<vmem>>, vector<16x32xbf16>,
    return
  }
  func.func @transform_0(%arg0: i32) -> (i32, i32) {
    %c0_i32 = arith.constant 0 : i32
    %c0_i32_0 = arith.constant 0 : i32
    return %arg0, %c0_i32 : i32, i32
  }
  func.func @transform_1(%arg0: i32) -> (i32, i32) {
    %c0_i32 = arith.constant 0 : i32
    %c0_i32_0 = arith.constant 0 : i32
    %c0_i32_1 = arith.constant 0 : i32
    return %c0_i32, %c0_i32_0 : i32, i32
  }
  func.func @transform_2(%arg0: i32) -> (i32, i32) {
    %c0_i32 = arith.constant 0 : i32
    %c0_i32_0 = arith.constant 0 : i32
    %c0_i32_1 = arith.constant 0 : i32
    return %c0_i32, %c0_i32_0 : i32, i32
  }
  func.func @transform_3(%arg0: i32) -> (i32, i32) {
    %c0_i32 = arith.constant 0 : i32
    %c0_i32_0 = arith.constant 0 : i32
    return %arg0, %c0_i32 : i32, i32
  }
}

module attributes {stable_mosaic.version = 11 : i64} {
  func.func @_readout_kernel(%arg0: i32, %arg1: i32, %arg2: memref<16x32xbf16, #tpu.memory_space<vmem>>, %arg3: memref<50x32xbf16, #tpu.memory_space<vmem>>, %arg4: memref<16x50xf32, #tpu.memory_space<vmem>>) attributes {dimension_semantics = [#tpu.dimension_semantics<parallel>, #tpu.dimension_semantics<parallel>], iteration_bounds = array<i64: 1, 1>, scalar_prefetch = 0 : i64, scratch_operands = 0 : i64, tpu.core_type = #tpu.core_type<tc>, window_params = [{transform_indices = @transform_0, window_bounds = array<i64: 16, 32>}, {transform_indices = @transform_1, window_bounds = array<i64: 50, 32>}, {transform_indices = @transform_2, window_bounds = array<i64: 16, 50>}]} {
    %c0 = arith.constant 0 : index
    %c0_0 = arith.constant 0 : index
    %0 = vector.load %arg2[%c0, %c0_0] : memref<16x32xbf16, #tpu.memory_space<vmem>>, vector<16x32xbf16>
    %c0_1 = arith.constant 0 : index
    %c0_2 = arith.constant 0 : index
    %1 = vector.load %arg3[%c0_1, %c0_2] : memref<50x32xbf16, #tpu.memory_space<vmem>>, vector<50x32xbf16>
    %cst = arith.constant dense<0.000000e+00> : vector<16x50xf32>
    %2 = tpu.matmul %0, %1, %cst {dimension_numbers = #tpu.dot_dimension_numbers<[1], [1], [0], [0], [0, 0, 1, 0], [], []>} : vector<16x32xbf16>, vector<50x32xbf16>, vector<16x50xf32> -> vector<16x50xf32>
    %c0_3 = arith.constant 0 : index
    %c0_4 = arith.constant 0 : index
    %3 = vector.load %arg4[%c0_3, %c0_4] : memref<16x50xf32, #tpu.memory_space<vmem>>, vector<16x50xf32>
    tpu.vector_store %arg4[%c0_3, %c0_4], %2 {strides = array<i32>} : memref<16x50xf32, #tpu.memory_space<vmem>>, vector<16x50xf32>,
    return
  }
  func.func @transform_0(%arg0: i32, %arg1: i32) -> (i32, i32) {
    %c0_i32 = arith.constant 0 : i32
    %c0_i32_0 = arith.constant 0 : i32
    return %arg0, %c0_i32 : i32, i32
  }
  func.func @transform_1(%arg0: i32, %arg1: i32) -> (i32, i32) {
    %c0_i32 = arith.constant 0 : i32
    %c0_i32_0 = arith.constant 0 : i32
    return %arg1, %c0_i32 : i32, i32
  }
  func.func @transform_2(%arg0: i32, %arg1: i32) -> (i32, i32) {
    %c0_i32 = arith.constant 0 : i32
    return %arg0, %arg1 : i32, i32
  }
}

</mosaic_0001>

<bundles_post_ra>
// kernel: transformer_decoder_forward.20
= control target key start
LH: loop header
LB: loop body
LE: loop exit
PB: predicated region body
PF: predicated region fallthrough
CT: control target
= control target key end

     0   :  { %vm52_vm0 = vcmask 261120   ;;  %v204_v0 = vmov 0.0   ;;  %vm205_vm1 = vmmov 0   ;;  %vm162_vm2 = vcmask 257024   ;;  %s275_s2 = inlined_call_operand.vmem [shape: bf16[32,32], index: 2, kind: input, shape index: {}]   ;;  %s276_s0 = inlined_call_operand.vmem [shape: bf16[16,32], index: 0, kind: input, shape index: {}]   ;;  %s277_s1 = inlined_call_operand.vmem [shape: bf16[16,32], index: 1, kind: input, shape index: {}]   ;;  %s278_s3 = inlined_call_operand.vmem [shape: f32[1,32], index: 3, kind: input, shape index: {}]   ;;  %s279_s4 = inlined_call_operand.vmem [shape: f32[1,32], index: 4, kind: input, shape index: {}]   ;;  %s280_s5 = inlined_call_operand.vmem [shape: f32[1,32], index: 5, kind: input, shape index: {}]   ;;  %s281_s6 = inlined_call_operand.vmem [shape: bf16[16,32], index: 6, kind: output, shape index: {}]  }
   0x1   :  { %187 = vmatprep.subr.bf16.mxu0 %v204_v0  ;;  %v197_v1 = vld [vmem:[%s275_s2] sm:$0xff]   ;;  %191 = vmatprep.mubr.msk.bf16.mxu0 %vm205_vm1, %v204_v0  ;;  %v198_v3 = vld [vmem:[%s275_s2 + $0x8] sm:$0xff]  }
   0x2   :  { %v57_v2 = vsel %vm52_vm0, %v197_v1, 0  ;;  %v60_v4 = vsel %vm52_vm0, %v198_v3, 0  ;;  %v199_v5 = vld [vmem:[%s276_s0] sm:$0xff]  }
   0x3   :  { %188 = vmatpush3.bf16.xpose.msra.mxu0 %v57_v2  ;;  %v181_v6 = vld [vmem:[%s277_s1] sm:$0xff]  }
   0x4   :  { %189 = vmatprep.subr.bf16.mxu0 %v204_v0  ;;  %v169_v7 = vld [vmem:[%s278_s3] ss:$0 sm:$0xff]  ;;  %v182_v8 = vunpack.c.l.bf16 %v181_v6  ;;  %v183_v12 = vunpack.c.h.bf16 %v181_v6 }
   0x5   :  { %v174_v37 = vld [vmem:[%s279_s4] ss:$0 sm:$0xff] }
   0x6   :  { %v175_v39 = vld [vmem:[%s280_s5] ss:$0 sm:$0xff] }
   0xb   :  { %190 = vmatpush3.bf16.xpose.msra.mxu0 %v60_v4 }
  0x12   :  { %192 = vmatmul.mubr.msk.bf16.vlgmr.msra.gmra.mrb[0].mxu0 %vm52_vm0, %v199_v5 }
  0xe5   :  { %v96_v9 = vpop.f32.mrb[0].mxu0 }
  0xe6   :  { %v97_v10 = vadd.f32 %v169_v7, %v96_v9  ;;  %v193_v11 = vpop.f32.mrb[1].mxu0 }
  0xe7   :  { %v99_v13 = vpop.f32.mrb[2].mxu0 }
  0xe8   :  { %v100_v14 = vadd.f32 %v169_v7, %v99_v13  ;;  %v194_v15 = vpop.f32.mrb[3].mxu0  ;;  %v107_v16 = vadd.f32 %v182_v8, %v97_v10 }
  0xea   :  { %v111_v17 = vsel %vm52_vm0, %v107_v16, 0.0  ;;  %v108_v18 = vadd.f32 %v183_v12, %v100_v14 }
  0xeb   :  { %112 = vadd.xlane.f32.xlu0 %v111_v17 }
  0xec   :  { %v114_v19 = vsel %vm52_vm0, %v108_v18, 0.0 }
  0xef   :  { %115 = vadd.xlane.f32.xlu0 %v114_v19 }
 0x178   :  { %v113_v20 = vpop.xlane.xlu0 %112 }
 0x179   :  { %v118_v21 = vmul.f32 0.03125, %v113_v20 }
 0x17b   :  { %v120_v22 = vsub.f32 %v107_v16, %v118_v21 }
 0x17c   :  { %v116_v23 = vpop.xlane.xlu0 %115 }
 0x17d   :  { %v119_v24 = vmul.f32 0.03125, %v116_v23  ;;  %v122_v25 = vmul.f32 %v120_v22, %v120_v22 }
 0x17f   :  { %v121_v26 = vsub.f32 %v108_v18, %v119_v24  ;;  %v124_v27 = vsel %vm52_vm0, %v122_v25, 0.0 }
 0x180   :  { %125 = vadd.xlane.f32.xlu1 %v124_v27 }
 0x181   :  { %v123_v28 = vmul.f32 %v121_v26, %v121_v26 }
 0x183   :  { %v127_v29 = vsel %vm52_vm0, %v123_v28, 0.0 }
 0x184   :  { %128 = vadd.xlane.f32.xlu1 %v127_v29 }
 0x20d   :  { %v126_v30 = vpop.xlane.xlu1 %125 }
 0x20e   :  { %v130_v31 = vmul.f32 0.03125, %v126_v30 }
 0x210   :  { %v132_v32 = vadd.f32 1e-05, %v130_v31 }
 0x211   :  { %v129_v33 = vpop.xlane.xlu1 %128 }
 0x212   :  { %200 = vrsqrt.f32 %v132_v32  ;;  %v131_v34 = vmul.f32 0.03125, %v129_v33 }
 0x214   :  { %v133_v35 = vadd.f32 1e-05, %v131_v34 }
 0x216   :  { %202 = vrsqrt.f32 %v133_v35 }
 0x21c   :  { %v201_v36 = vpop.eup %200 }
 0x21d   :  { %v136_v38 = vmul.f32 %v201_v36, %v120_v22 }
 0x21f   :  { %v144_v40 = vmul.f32 %v174_v37, %v136_v38 }
 0x220   :  { %v203_v41 = vpop.eup %202 }
 0x221   :  { %v152_v42 = vadd.f32 %v175_v39, %v144_v40  ;;  %v137_v43 = vmul.f32 %v203_v41, %v121_v26 }
 0x223   :  { %v178_v44 = vpack.c.bf16 %v152_v42, %v152_v42  ;;  %v145_v45 = vmul.f32 %v174_v37, %v137_v43 }
 0x225   :  { %163 = vst.msk [vmem:[%s281_s6] sm:$0xf] %vm162_vm2, %v178_v44  ;;  %v153_v46 = vadd.f32 %v175_v39, %v145_v45 }
 0x227   :  { %v179_v47 = vpack.c.bf16 %v153_v46, %v153_v46 }
 0x229   :  { %164 = vst.msk [vmem:[%s281_s6 + $0x4] sm:$0xf] %vm162_vm2, %v179_v47 }

// kernel: transformer_decoder_forward.21
= control target key start
LH: loop header
LB: loop body
LE: loop exit
PB: predicated region body
PF: predicated region fallthrough
CT: control target
= control target key end

     0   :  { %vm43_vm0 = vcmask 261120   ;;  %v134_v0 = vmov 0.0   ;;  %vm135_vm1 = vmmov 0   ;;  %vm102_vm2 = vcmask 257024   ;;  %s174_s1 = inlined_call_operand.vmem [shape: bf16[32,32], index: 1, kind: input, shape index: {}]   ;;  %s175_s0 = inlined_call_operand.vmem [shape: bf16[16,32], index: 0, kind: input, shape index: {}]   ;;  %s176_s2 = inlined_call_operand.vmem [shape: f32[1,32], index: 2, kind: input, shape index: {}]   ;;  %s177_s3 = inlined_call_operand.vmem [shape: bf16[16,32], index: 3, kind: output, shape index: {}]  }
   0x1   :  { %121 = vmatprep.subr.bf16.mxu0 %v134_v0  ;;  %v131_v1 = vld [vmem:[%s174_s1] sm:$0xff]   ;;  %125 = vmatprep.mubr.msk.bf16.mxu0 %vm135_vm1, %v134_v0  ;;  %v132_v3 = vld [vmem:[%s174_s1 + $0x8] sm:$0xff]  }
   0x2   :  { %v48_v2 = vsel %vm43_vm0, %v131_v1, 0  ;;  %v51_v4 = vsel %vm43_vm0, %v132_v3, 0  ;;  %v133_v5 = vld [vmem:[%s175_s0] sm:$0xff]  }
   0x3   :  { %122 = vmatpush3.bf16.xpose.msra.mxu0 %v48_v2  ;;  %v109_v6 = vld [vmem:[%s176_s2] ss:$0 sm:$0xff] }
   0x4   :  { %123 = vmatprep.subr.bf16.mxu0 %v134_v0 }
   0xb   :  { %124 = vmatpush3.bf16.xpose.msra.mxu0 %v51_v4 }
  0x12   :  { %126 = vmatmul.mubr.msk.bf16.vlgmr.msra.gmra.mrb[0].mxu0 %vm43_vm0, %v133_v5 }
  0xe5   :  { %v87_v7 = vpop.f32.mrb[0].mxu0 }
  0xe6   :  { %v88_v8 = vadd.f32 %v109_v6, %v87_v7  ;;  %v127_v9 = vpop.f32.mrb[1].mxu0 }
  0xe7   :  { %v90_v10 = vpop.f32.mrb[2].mxu0 }
  0xe8   :  { %v116_v11 = vpack.c.bf16 %v88_v8, %v88_v8  ;;  %v91_v12 = vadd.f32 %v109_v6, %v90_v10  ;;  %v128_v13 = vpop.f32.mrb[3].mxu0 }
  0xea   :  { %103 = vst.msk [vmem:[%s177_s3] sm:$0xf] %vm102_vm2, %v116_v11  ;;  %v117_v14 = vpack.c.bf16 %v91_v12, %v91_v12 }
  0xec   :  { %104 = vst.msk [vmem:[%s177_s3 + $0x4] sm:$0xf] %vm102_vm2, %v117_v14 }

// kernel: transformer_decoder_forward.18
= control target key start
LH: loop header
LB: loop body
LE: loop exit
PB: predicated region body
PF: predicated region fallthrough
CT: control target
= control target key end

     0   :  { %vm71_vm0 = vcmask 261120   ;;  %v194_v0 = vmov 0.0   ;;  %vm195_vm1 = vmmov 0   ;;  %vm142_vm2 = vcmask 781312   ;;  %s253_s1 = inlined_call_operand.vmem [shape: bf16[96,32], index: 1, kind: input, shape index: {}]   ;;  %s254_s0 = inlined_call_operand.vmem [shape: bf16[16,32], index: 0, kind: input, shape index: {}]   ;;  %s255_s2 = inlined_call_operand.vmem [shape: f32[1,96], index: 2, kind: input, shape index: {}]   ;;  %s256_s3 = inlined_call_operand.vmem [shape: bf16[16,96], index: 3, kind: output, shape index: {}]  }
   0x1   :  { %169 = vmatprep.subr.bf16.mxu0 %v194_v0  ;;  %v187_v1 = vld [vmem:[%s253_s1] sm:$0xff]   ;;  %181 = vmatprep.mubr.msk.bf16.mxu0 %vm195_vm1, %v194_v0  ;;  %v188_v3 = vld [vmem:[%s253_s1 + $0x8] sm:$0xff]   ;;  %v189_v5 = vld [vmem:[%s253_s1 + $0x10] sm:$0xff]  }
   0x2   :  { %v76_v2 = vsel %vm71_vm0, %v187_v1, 0  ;;  %v79_v4 = vsel %vm71_vm0, %v188_v3, 0  ;;  %v82_v6 = vsel %vm71_vm0, %v189_v5, 0  ;;  %v190_v7 = vld [vmem:[%s253_s1 + $0x18] sm:$0xff]   ;;  %v191_v9 = vld [vmem:[%s253_s1 + $0x20] sm:$0xff]   ;;  %v192_v11 = vld [vmem:[%s253_s1 + $0x28] sm:$0xff]  }
   0x3   :  { %170 = vmatpush3.bf16.xpose.msra.mxu0 %v76_v2  ;;  %v85_v8 = vsel %vm71_vm0, %v190_v7, 0  ;;  %v88_v10 = vsel %vm71_vm0, %v191_v9, 0  ;;  %v91_v12 = vsel %vm71_vm0, %v192_v11, 0  ;;  %v193_v13 = vld [vmem:[%s254_s0] sm:$0xff]  }
   0x4   :  { %171 = vmatprep.subr.bf16.mxu0 %v194_v0  ;;  %v149_v14 = vld [vmem:[%s255_s2] ss:$0 sm:$0xff] }
   0xb   :  { %172 = vmatpush3.bf16.xpose.msra.mxu0 %v79_v4 }
   0xc   :  { %173 = vmatprep.subr.bf16.mxu0 %v194_v0 }
  0x13   :  { %174 = vmatpush3.bf16.xpose.msra.mxu0 %v82_v6 }
  0x14   :  { %175 = vmatprep.subr.bf16.mxu0 %v194_v0 }
  0x1b   :  { %176 = vmatpush3.bf16.xpose.msra.mxu0 %v85_v8 }
  0x1c   :  { %177 = vmatprep.subr.bf16.mxu0 %v194_v0 }
  0x23   :  { %178 = vmatpush3.bf16.xpose.msra.mxu0 %v88_v10 }
  0x24   :  { %179 = vmatprep.subr.bf16.mxu0 %v194_v0 }
  0x2b   :  { %180 = vmatpush3.bf16.xpose.msra.mxu0 %v91_v12 }
  0x32   :  { %182 = vmatmul.mubr.msk.bf16.vlgmr.msra.gmra.mrb[0].mxu0 %vm71_vm0, %v193_v13 }
 0x105   :  { %v127_v15 = vpop.f32.mrb[0].mxu0 }
 0x106   :  { %v128_v16 = vadd.f32 %v149_v14, %v127_v15  ;;  %v183_v17 = vpop.f32.mrb[1].mxu0 }
 0x107   :  { %v130_v18 = vpop.f32.mrb[2].mxu0 }
 0x108   :  { %v160_v19 = vpack.c.bf16 %v128_v16, %v128_v16  ;;  %v131_v20 = vadd.f32 %v149_v14, %v130_v18  ;;  %v184_v21 = vpop.f32.mrb[3].mxu0 }
 0x10a   :  { %143 = vst.msk [vmem:[%s256_s3] sm:$0xf] %vm142_vm2, %v160_v19  ;;  %v161_v22 = vpack.c.bf16 %v131_v20, %v131_v20 }
 0x10c   :  { %144 = vst.msk [vmem:[%s256_s3 + $0x4] sm:$0xf] %vm142_vm2, %v161_v22 }

// kernel: transformer_decoder_forward.19
= control target key start
LH: loop header
LB: loop body
LE: loop exit
PB: predicated region body
PF: predicated region fallthrough
CT: control target
= control target key end

     0   :  { %s1132_s15 = smov 0   ;;  %s1134_s16 = smov 0   ;;  %s1259_s0 = inlined_call_operand.vmem [shape: f32[8,8], index: 0, kind: input, shape index: {}]   ;;  %s1260_s1 = inlined_call_operand.vmem [shape: f32[2,1,8], index: 1, kind: input, shape index: {}]   ;;  %s1261_s2 = inlined_call_operand.vmem [shape: bf16[2,8,96], index: 2, kind: input, shape index: {}, may-alias: {2,3}]   ;;  %s1262_s3 = inlined_call_operand.vmem [shape: bf16[2,8,96], index: 3, kind: input, shape index: {}, may-alias: {2,3}]   ;;  %s1263_s4 = inlined_call_operand.vmem [shape: bf16[2,8,32], index: 4, kind: output, shape index: {}]  }
   0x1   :  { %s1136_s17 = smov 0  }
   0x2 LB: > { %s33_s18 = sadd.s32 1, %s1085_s16  ;;  %p912_p0 = scmp.ge.s32.totalorder %s1089_s17, 1  ;;  %s1089_s17 = sphi %s1136_s17, %s14_s17   ;;  %s1085_s16 = sphi %s1134_s16, %s1265_s16   ;;  %s1081_s15 = sphi %s1132_s15, %s1264_s15  }
   0x3   : > { %p35_p1 = scmp.ge.s32.totalorder %s33_s18, 2  ;;  %p213_p2 = scmp.lt.s32.totalorder %s1089_s17, 3 }
   0x5   : > { %s1267_s18 = smov (%p35_p1, %s33_s18), 0  ;;  %p214_p3 = pnand %p912_p0, %p213_p2 }
   0x6   : > { %p258_p4 = scmp.lt.s32.totalorder (!%p214_p3), %s1081_s15, 1  ;;  %v1091_v0 = vmov (!%p214_p3), 0.0   ;;  %vm1092_vm0 = vmmov (!%p214_p3), 0   ;;  %s1093_s26 = smov (!%p214_p3), 96   ;;  %vm296_vm1 = vcmask (!%p214_p3), 64512   ;;  %v281_v12 = vld [vmem:[%s1259_s0] sm:$0xff] (!%p214_p3) }
   0x7   : > { %217 = sbr.rel (%p214_p3) target bundleno = 1249 (0x4e1), region = 36  ;;  %956 = vmatprep.subr.bf16.mxu0 (!%p214_p3), %v1091_v0  ;;  %958 = vmatprep.mubr.msk.bf16.mxu0 (!%p214_p3), %vm1092_vm0, %v1091_v0  ;;  %s1094_s27 = smov (!%p214_p3), 64   ;;  %vm361_vm2 = vcmask (!%p214_p3), 1043456   ;;  %vm407_vm3 = vcmask (!%p214_p3), 60416   ;;  %vm536_vm4 = vcmask (!%p214_p3), 126016   ;;  %vm665_vm5 = vcmask (!%p214_p3), 191616  }
   0x8   : > { %962 = vmatprep.subr.bf16.mxu1 (!%p214_p3), %v1091_v0  ;;  %964 = vmatprep.mubr.msk.bf16.mxu1 (!%p214_p3), %vm1092_vm0, %v1091_v0  ;;  %s1095_s28 = smov (!%p214_p3), 88   ;;  %s1096_s29 = smov (!%p214_p3), 120   ;;  %vm794_vm6 = vcmask (!%p214_p3), 257216  }
   0x9   : > { %s1097_s30 = smov (!%p214_p3), 80   ;;  %s1098_s5 = smov (!%p214_p3), 112  }
   0xa   : > { %s1099_s6 = smov (!%p214_p3), 72   ;;  %s1100_s7 = smov (!%p214_p3), 104  }
   0xb   : > { %s1101_s13 = smov (!%p214_p3), 56   ;;  %s1102_s14 = smov (!%p214_p3), 48  }
   0xc   : > { %s1104_s23 = smov (!%p214_p3), 8   ;;  %s1106_s24 = smov (!%p214_p3), 24  }
   0xe   : > { %s1269_s15 = smov (!%p258_p4, %s1081_s15), 1 }
   0xf   : > { %s1159_s19 = sshll.u32 %s1269_s15, 2  ;;  %s260_s10 = scalar_lea.vmem %s1260_s1, %s1269_s15 }
  0x10   : > { %s271_s22 = scalar_lea.vmem %s1262_s3, %s1159_s19  ;;  %s267_s25 = scalar_lea.vmem %s1261_s2, %s1159_s19  ;;  %v916_v11 = vld [vmem:[%s260_s10] ss:$0 sm:$0xff] }
  0x11   : > { %v1044_v1 = vld [vmem:[%s271_s22] ss:$0 sps:$4 sm:$0xff]   ;;  %v1187_v13 = vadd.f32 %v916_v11, %v281_v12  ;;  %s1103_s15 = smov 40  }
  0x12   : > { %294 = vrot.lane.b32.xlu0 %v1044_v1, %s1093_s26  ;;  %v289_v4 = vld [vmem:[%s267_s25] sm:$0xf]  ;;  %356 = vrot.lane.b32.xlu1 %v1044_v1, %s1094_s27 }
  0x13   : > { %v1045_v5 = vld [vmem:[%s271_s22] ss:$0 sps:$4 sm:$0xff]  }
  0x14   : > { %v1046_v6 = vld [vmem:[%s267_s25] ss:$0 sps:$4 sm:$0xff]  }
  0x15   : > { %v1174_v7 = vld [vmem:[%s271_s22] ss:$0 sps:$4 sm:$0xff]  }
  0x16   : > { %419 = vrot.lane.b32.xlu1 %v1045_v5, %s1095_s28  ;;  %v1048_v8 = vld [vmem:[%s267_s25] ss:$0 sps:$4 sm:$0xff]  }
  0x17   : > { %v1177_v9 = vld [vmem:[%s271_s22] ss:$0 sps:$4 sm:$0xff]   ;;  %s1244_s22 = scalar_lea.vmem %s1263_s4, %s1159_s19  ;;  %s1105_s19 = smov 16  }
  0x18   : > { %v1050_v10 = vld [vmem:[%s267_s25] ss:$0 sps:$4 sm:$0xff]  }
  0x1a   : > { %414 = vrot.lane.b32.xlu1 %v1046_v6, %s1096_s29 }
  0x1e   : > { %548 = vrot.lane.b32.xlu1 %v1174_v7, %s1097_s30 }
  0x22   : > { %543 = vrot.lane.b32.xlu1 %v1048_v8, %s1098_s5 }
  0x26   : > { %677 = vrot.lane.b32.xlu1 %v1177_v9, %s1099_s6 }
  0x2a   : > { %672 = vrot.lane.b32.xlu1 %v1050_v10, %s1100_s7 }
  0x84   : > { %v295_v2 = vpop.permute.xlu0 %294  ;;  %v357_v21 = vpop.permute.xlu1 %356 }
  0x85   : > { %v301_v3 = vsel %vm296_vm1, %v295_v2, 0  ;;  %v363_v22 = vsel %vm361_vm2, %v357_v21, 0 }
  0x86   : > { %957 = vmatpush3.bf16.xpose.msra.mxu0 %v301_v3  ;;  %963 = vmatpush3.bf16.msra.mxu1 %v363_v22 }
  0x87   : > { %974 = vmatprep.subr.bf16.mxu0 %v1091_v0  ;;  %968 = vmatprep.subr.bf16.mxu1 %v1091_v0 }
  0x88   : > { %v420_v26 = vpop.permute.xlu1 %419 }
  0x89   : > { %v425_v29 = vsel %vm296_vm1, %v420_v26, 0 }
  0x8c   : > { %v415_v27 = vpop.permute.xlu1 %414 }
  0x8d   : > { %959 = vmatmul.mubr.msk.bf16.vlgmr.msra.gmra.mrb[0].mxu0 %vm296_vm1, %v289_v4 }
  0x8e   : > { %976 = vmatprep.mubr.msk.bf16.mxu0 %vm1092_vm0, %v1091_v0 }
  0x90   : > { %v549_v31 = vpop.permute.xlu1 %548 }
  0x91   : > { %v554_v33 = vsel %vm296_vm1, %v549_v31, 0 }
  0x94   : > { %v544_v32 = vpop.permute.xlu1 %543 }
  0x98   : > { %v678_v34 = vpop.permute.xlu1 %677 }
  0x99   : > { %v683_v35 = vsel %vm296_vm1, %v678_v34, 0 }
  0x9c   : > { %v673_v36 = vpop.permute.xlu1 %672 }
 0x160   : > { %v337_v14 = vpop.f32.mrb[0].mxu0 }
 0x161   : > { %v343_v15 = vmul.f32 0.35355338, %v337_v14  ;;  %v960_v16 = vpop.f32.mrb[1].mxu0 }
 0x162   : > { %v340_v17 = vpop.f32.mrb[2].mxu0 }
 0x163   : > { %v961_v18 = vpop.f32.mrb[3].mxu0  ;;  %v344_v19 = vadd.f32 %v343_v15, %v1187_v13 }
 0x165   : > { %v345_v20 = vsel %vm296_vm1, %v344_v19, -inf }
 0x166   : > { %346 = vmax.xlane.f32.xlu0 %v345_v20 }
 0x17c   : > { %480 = vrot.lane.b32.xlu0 %v1045_v5, %s1101_s13 }
 0x1f3   : > { %v347_v23 = vpop.xlane.xlu0 %346 }
 0x1f4   : > { %v348_v24 = vsub.f32 %v344_v19, %v347_v23 }
 0x1f6   : > { %v349_v25 = vmul.f32 1.442695, %v348_v24 }
 0x1f7   : > { %v481_v37 = vpop.permute.xlu0 %480 }
 0x1f8   : > { %1051 = vpow2.f32 %v349_v25  ;;  %v486_v38 = vsel %vm361_vm2, %v481_v37, 0 }
 0x1f9   : > { %975 = vmatpush3.bf16.msra.mxu0 %v486_v38 }
 0x1fa   : > { %986 = vmatprep.subr.bf16.mxu0 %v1091_v0 }
 0x202   : > { %v1193_v28 = vpop.eup %1051 }
 0x203   : > { %v355_v30 = vpack.c.bf16 %v1193_v28, %v1193_v28  ;;  %v351_v23 = vsel %vm296_vm1, %v1193_v28, 0.0 }
 0x205   : > { %965 = vmatmul.mubr.msk.bf16.vlgmr.msra.gmra.mrb[0].mxu1 %vm296_vm1, %v355_v30 }
 0x206   : > { %969 = vmatpush3.bf16.xpose.msra.mxu1 %v425_v29  ;;  %970 = vmatprep.mubr.msk.bf16.mxu1 %vm1092_vm0, %v1091_v0 }
 0x207   : > { %980 = vmatprep.subr.bf16.mxu1 %v1091_v0 }
 0x20d   : > { %971 = vmatmul.mubr.msk.bf16.vlgmr.msra.gmra.mrb[4].mxu1 %vm296_vm1, %v415_v27 }
 0x20e   : > { %981 = vmatpush3.bf16.xpose.msra.mxu1 %v554_v33  ;;  %982 = vmatprep.mubr.msk.bf16.mxu1 %vm1092_vm0, %v1091_v0 }
 0x20f   : > { %992 = vmatprep.subr.bf16.mxu1 %v1091_v0 }
 0x215   : > { %983 = vmatmul.mubr.msk.bf16.vlgmr.msra.gmra.mrb[8].mxu1 %vm296_vm1, %v544_v32 }
 0x216   : > { %993 = vmatpush3.bf16.xpose.msra.mxu1 %v683_v35  ;;  %994 = vmatprep.mubr.msk.bf16.mxu1 %vm1092_vm0, %v1091_v0 }
 0x21d   : > { %995 = vmatmul.mubr.msk.bf16.vlgmr.msra.gmra.mrb[12].mxu1 %vm296_vm1, %v673_v36 }
 0x2d8   : > { %v1214_v39 = vpop.f32.mrb[0].mxu1 }
 0x2d9   : > { %v966_v40 = vpop.f32.mrb[1].mxu1 }
 0x2da   : > { %v402_v41 = vpop.f32.mrb[2].mxu1 }
 0x2db   : > { %v967_v42 = vpop.f32.mrb[3].mxu1 }
 0x2e0   : > { %v461_v43 = vpop.f32.mrb[4].mxu1 }
 0x2e1   : > { %v467_v44 = vmul.f32 0.35355338, %v461_v43  ;;  %v972_v45 = vpop.f32.mrb[5].mxu1 }
 0x2e2   : > { %v464_v46 = vpop.f32.mrb[6].mxu1 }
 0x2e3   : > { %v973_v47 = vpop.f32.mrb[7].mxu1  ;;  %v468_v48 = vadd.f32 %v467_v44, %v1187_v13 }
 0x2e5   : > { %v469_v49 = vsel %vm296_vm1, %v468_v48, -inf }
 0x2e6   : > { %470 = vmax.xlane.f32.xlu1 %v469_v49 }
 0x2e8   : > { %v590_v50 = vpop.f32.mrb[8].mxu1 }
 0x2e9   : > { %v596_v51 = vmul.f32 0.35355338, %v590_v50  ;;  %v984_v52 = vpop.f32.mrb[9].mxu1 }
 0x2ea   : > { %v593_v53 = vpop.f32.mrb[10].mxu1 }
 0x2eb   : > { %v985_v54 = vpop.f32.mrb[11].mxu1  ;;  %v597_v55 = vadd.f32 %v596_v51, %v1187_v13 }
 0x2ed   : > { %v598_v56 = vsel %vm296_vm1, %v597_v55, -inf }
 0x2ee   : > { %599 = vmax.xlane.f32.xlu0 %v598_v56 }
 0x2f0   : > { %v719_v57 = vpop.f32.mrb[12].mxu1 }
 0x2f1   : > { %v725_v58 = vmul.f32 0.35355338, %v719_v57  ;;  %v996_v59 = vpop.f32.mrb[13].mxu1 }
 0x2f2   : > { %v722_v60 = vpop.f32.mrb[14].mxu1 }
 0x2f3   : > { %v997_v61 = vpop.f32.mrb[15].mxu1  ;;  %v726_v62 = vadd.f32 %v725_v58, %v1187_v13 }
 0x2f5   : > { %v727_v63 = vsel %vm296_vm1, %v726_v62, -inf }
 0x2f6   : > { %728 = vmax.xlane.f32.xlu0 %v727_v63 }
 0x2f7   : > { %609 = vrot.lane.b32.xlu1 %v1174_v7, %s1102_s14 }
 0x30c   : > { %738 = vrot.lane.b32.xlu0 %v1177_v9, %s1103_s15 }
 0x373   : > { %v471_v1 = vpop.xlane.xlu1 %470 }
 0x374   : > { %v472_v2 = vsub.f32 %v468_v48, %v471_v1 }
 0x376   : > { %v473_v3 = vmul.f32 1.442695, %v472_v2 }
 0x377   : > { %v610_v8 = vpop.permute.xlu1 %609 }
 0x378   : > { %1053 = vpow2.f32 %v473_v3  ;;  %v615_v11 = vsel %vm361_vm2, %v610_v8, 0 }
 0x37b   : > { %v600_v4 = vpop.xlane.xlu0 %599 }
 0x37c   : > { %v601_v5 = vsub.f32 %v597_v55, %v600_v4 }
 0x37e   : > { %v602_v6 = vmul.f32 1.442695, %v601_v5 }
 0x380   : > { %1055 = vpow2.f32 %v602_v6 }
 0x382   : > { %v1054_v10 = vpop.eup %1053 }
 0x383   : > { %v729_v12 = vpop.xlane.xlu0 %728  ;;  %v475_v13 = vsel %vm296_vm1, %v1054_v10, 0.0  ;;  %v479_v14 = vpack.c.bf16 %v1054_v10, %v1054_v10 }
 0x384   : > { %v730_v7 = vsub.f32 %v726_v62, %v729_v12  ;;  %476 = vadd.xlane.f32.xlu0 %v475_v13 }
 0x385   : > { %977 = vmatmul.mubr.msk.bf16.vlgmr.msra.gmra.mrb[4].mxu0 %vm296_vm1, %v479_v14 }
 0x386   : > { %v731_v9 = vmul.f32 1.442695, %v730_v7  ;;  %987 = vmatpush3.bf16.msra.mxu0 %v615_v11  ;;  %988 = vmatprep.mubr.msk.bf16.mxu0 %vm1092_vm0, %v1091_v0 }
 0x387   : > { %998 = vmatprep.subr.bf16.mxu0 %v1091_v0  ;;  %v739_v15 = vpop.permute.xlu0 %738 }
 0x388   : > { %1057 = vpow2.f32 %v731_v9  ;;  %v744_v17 = vsel %vm361_vm2, %v739_v15, 0 }
 0x38a   : > { %v1056_v16 = vpop.eup %1055 }
 0x38b   : > { %v604_v18 = vsel %vm296_vm1, %v1056_v16, 0.0  ;;  %v608_v19 = vpack.c.bf16 %v1056_v16, %v1056_v16 }
 0x38c   : > { %605 = vadd.xlane.f32.xlu1 %v604_v18 }
 0x38d   : > { %989 = vmatmul.mubr.msk.bf16.vlgmr.msra.gmra.mrb[8].mxu0 %vm296_vm1, %v608_v19 }
 0x38e   : > { %999 = vmatpush3.bf16.msra.mxu0 %v744_v17  ;;  %1000 = vmatprep.mubr.msk.bf16.mxu0 %vm1092_vm0, %v1091_v0 }
 0x392   : > { %v1058_v20 = vpop.eup %1057 }
 0x393   : > { %v733_v21 = vsel %vm296_vm1, %v1058_v20, 0.0  ;;  %v737_v22 = vpack.c.bf16 %v1058_v20, %v1058_v20 }
 0x394   : > { %734 = vadd.xlane.f32.xlu0 %v733_v21 }
 0x395   : > { %1001 = vmatmul.mubr.msk.bf16.vlgmr.msra.gmra.mrb[12].mxu0 %vm296_vm1, %v737_v22 }
 0x398   : > { %352 = vadd.xlane.f32.xlu0 %v351_v23 }
 0x411   : > { %v477_v24 = vpop.xlane.xlu0 %476 }
 0x419   : > { %v606_v30 = vpop.xlane.xlu1 %605 }
 0x421   : > { %v735_v25 = vpop.xlane.xlu0 %734 }
 0x425   : > { %v353_v26 = vpop.xlane.xlu0 %352 }
 0x426   : > { %1059 = vrcp.f32 %v353_v26 }
 0x427   : > { %1061 = vrcp.f32 %v477_v24 }
 0x428   : > { %1063 = vrcp.f32 %v606_v30 }
 0x429   : > { %1065 = vrcp.f32 %v735_v25 }
 0x430   : > { %v1060_v27 = vpop.eup %1059 }
 0x431   : > { %v405_v29 = vmul.f32 %v1060_v27, %v1214_v39  ;;  %v1062_v28 = vpop.eup %1061 }
 0x432   : > { %v1064_v37 = vpop.eup %1063 }
 0x433   : > { %v406_v0 = vpack.c.bf16 %v405_v29, %v405_v29  ;;  %v1066_v44 = vpop.eup %1065 }
 0x435   : > { %408 = vst.msk [vmem:[%s1244_s22] sm:$0xf] %vm407_vm3, %v406_v0 }
 0x458   : > { %v522_v31 = vpop.f32.mrb[4].mxu0 }
 0x459   : > { %v528_v32 = vmul.f32 %v1062_v28, %v522_v31  ;;  %v978_v33 = vpop.f32.mrb[5].mxu0 }
 0x45a   : > { %v525_v34 = vpop.f32.mrb[6].mxu0 }
 0x45b   : > { %v937_v35 = vpack.c.bf16 %v528_v32, %v528_v32  ;;  %v979_v36 = vpop.f32.mrb[7].mxu0 }
 0x45d   : > { %533 = vrot.lane.b32.xlu0 %v937_v35, %s1104_s23 }
 0x460   : > { %v651_v38 = vpop.f32.mrb[8].mxu0 }
 0x461   : > { %v657_v39 = vmul.f32 %v1064_v37, %v651_v38  ;;  %v990_v40 = vpop.f32.mrb[9].mxu0 }
 0x462   : > { %v654_v41 = vpop.f32.mrb[10].mxu0 }
 0x463   : > { %v938_v42 = vpack.c.bf16 %v657_v39, %v657_v39  ;;  %v991_v43 = vpop.f32.mrb[11].mxu0 }
 0x465   : > { %662 = vrot.lane.b32.xlu1 %v938_v42, %s1105_s19 }
 0x468   : > { %v780_v45 = vpop.f32.mrb[12].mxu0 }
 0x469   : > { %v786_v46 = vmul.f32 %v1066_v44, %v780_v45  ;;  %v1002_v47 = vpop.f32.mrb[13].mxu0 }
 0x46a   : > { %v783_v48 = vpop.f32.mrb[14].mxu0 }
 0x46b   : > { %v939_v49 = vpack.c.bf16 %v786_v46, %v786_v46  ;;  %v1003_v50 = vpop.f32.mrb[15].mxu0 }
 0x46d   : > { %791 = vrot.lane.b32.xlu0 %v939_v49, %s1106_s24 }
 0x4cf   : > { %v534_v51 = vpop.permute.xlu0 %533 }
 0x4d0   : > { %537 = vst.msk [vmem:[%s1244_s22] sm:$0xf] %vm536_vm4, %v534_v51 }
 0x4d7   : > { %v663_v52 = vpop.permute.xlu1 %662 }
 0x4d8   : > { %666 = vst.msk [vmem:[%s1244_s22] sm:$0xf] %vm665_vm5, %v663_v52 }
 0x4df   : > { %v792_v53 = vpop.permute.xlu0 %791 }
 0x4e0   : > { %795 = vst.msk [vmem:[%s1244_s22] sm:$0xf] %vm794_vm6, %v792_v53 }
 0x4e1 PF: > { %s14_s17 = sadd.s32 1, %s1089_s17   ;;  %s1264_s15 = smov %s1085_s16 }
 0x4e2   : > { %p11_p5 = scmp.ge.s32.totalorder %s14_s17, 4   ;;  %s1265_s16 = smov %s1267_s18 }
 0x4e4   :  { %13 = sbr.rel (!%p11_p5) target bundleno = 2 (0x2), region = 75 }

// kernel: transformer_decoder_forward.22
= control target key start
LH: loop header
LB: loop body
LE: loop exit
PB: predicated region body
PF: predicated region fallthrough
CT: control target
= control target key end

     0   :  { %vm57_vm0 = vcmask 261120   ;;  %v164_v0 = vmov 0.0   ;;  %vm165_vm1 = vmmov 0   ;;  %vm122_vm2 = vcmask 519168   ;;  %s215_s1 = inlined_call_operand.vmem [shape: bf16[64,32], index: 1, kind: input, shape index: {}]   ;;  %s216_s0 = inlined_call_operand.vmem [shape: bf16[16,32], index: 0, kind: input, shape index: {}]   ;;  %s217_s2 = inlined_call_operand.vmem [shape: f32[1,64], index: 2, kind: input, shape index: {}]   ;;  %s218_s3 = inlined_call_operand.vmem [shape: bf16[16,64], index: 3, kind: output, shape index: {}]  }
   0x1   :  { %145 = vmatprep.subr.bf16.mxu0 %v164_v0  ;;  %v159_v1 = vld [vmem:[%s215_s1] sm:$0xff]   ;;  %153 = vmatprep.mubr.msk.bf16.mxu0 %vm165_vm1, %v164_v0  ;;  %v160_v3 = vld [vmem:[%s215_s1 + $0x8] sm:$0xff]   ;;  %v161_v5 = vld [vmem:[%s215_s1 + $0x10] sm:$0xff]  }
   0x2   :  { %v62_v2 = vsel %vm57_vm0, %v159_v1, 0  ;;  %v65_v4 = vsel %vm57_vm0, %v160_v3, 0  ;;  %v68_v6 = vsel %vm57_vm0, %v161_v5, 0  ;;  %v162_v7 = vld [vmem:[%s215_s1 + $0x18] sm:$0xff]   ;;  %v163_v9 = vld [vmem:[%s216_s0] sm:$0xff]  }
   0x3   :  { %146 = vmatpush3.bf16.xpose.msra.mxu0 %v62_v2  ;;  %v71_v8 = vsel %vm57_vm0, %v162_v7, 0  ;;  %v129_v10 = vld [vmem:[%s217_s2] ss:$0 sm:$0xff] }
   0x4   :  { %147 = vmatprep.subr.bf16.mxu0 %v164_v0 }
   0xb   :  { %148 = vmatpush3.bf16.xpose.msra.mxu0 %v65_v4 }
   0xc   :  { %149 = vmatprep.subr.bf16.mxu0 %v164_v0 }
  0x13   :  { %150 = vmatpush3.bf16.xpose.msra.mxu0 %v68_v6 }
  0x14   :  { %151 = vmatprep.subr.bf16.mxu0 %v164_v0 }
  0x1b   :  { %152 = vmatpush3.bf16.xpose.msra.mxu0 %v71_v8 }
  0x22   :  { %154 = vmatmul.mubr.msk.bf16.vlgmr.msra.gmra.mrb[0].mxu0 %vm57_vm0, %v163_v9 }
  0xf5   :  { %v107_v11 = vpop.f32.mrb[0].mxu0 }
  0xf6   :  { %v108_v12 = vadd.f32 %v129_v10, %v107_v11  ;;  %v155_v13 = vpop.f32.mrb[1].mxu0 }
  0xf7   :  { %v110_v14 = vpop.f32.mrb[2].mxu0 }
  0xf8   :  { %v138_v15 = vpack.c.bf16 %v108_v12, %v108_v12  ;;  %v111_v16 = vadd.f32 %v129_v10, %v110_v14  ;;  %v156_v17 = vpop.f32.mrb[3].mxu0 }
  0xfa   :  { %123 = vst.msk [vmem:[%s218_s3] sm:$0xf] %vm122_vm2, %v138_v15  ;;  %v139_v18 = vpack.c.bf16 %v111_v16, %v111_v16 }
  0xfc   :  { %124 = vst.msk [vmem:[%s218_s3 + $0x4] sm:$0xf] %vm122_vm2, %v139_v18 }

// kernel: transformer_decoder_forward.23
= control target key start
LH: loop header
LB: loop body
LE: loop exit
PB: predicated region body
PF: predicated region fallthrough
CT: control target
= control target key end

     0   :  { %s1054_s12 = smov 0   ;;  %s1056_s13 = smov 0   ;;  %s1182_s0 = inlined_call_operand.vmem [shape: f32[2,1,8], index: 0, kind: input, shape index: {}]   ;;  %s1183_s1 = inlined_call_operand.vmem [shape: bf16[2,8,32], index: 1, kind: input, shape index: {}]   ;;  %s1184_s2 = inlined_call_operand.vmem [shape: bf16[2,8,64], index: 2, kind: input, shape index: {}]   ;;  %s1185_s3 = inlined_call_operand.vmem [shape: bf16[2,8,32], index: 3, kind: output, shape index: {}]  }
   0x1   :  { %s1058_s14 = smov 0  }
   0x2 LB: > { %s32_s15 = sadd.s32 1, %s1016_s13  ;;  %p847_p0 = scmp.ge.s32.totalorder %s1020_s14, 1  ;;  %s1020_s14 = sphi %s1058_s14, %s13_s14   ;;  %s1016_s13 = sphi %s1056_s13, %s1187_s13   ;;  %s1012_s12 = sphi %s1054_s12, %s1186_s12  }
   0x3   : > { %p34_p1 = scmp.ge.s32.totalorder %s32_s15, 2  ;;  %p179_p2 = scmp.lt.s32.totalorder %s1020_s14, 3 }
   0x5   : > { %s1189_s15 = smov (%p34_p1, %s32_s15), 0  ;;  %p180_p3 = pnand %p847_p0, %p179_p2 }
   0x6   : > { %p214_p4 = scmp.lt.s32.totalorder (!%p180_p3), %s1012_s12, 1  ;;  %v1022_v0 = vmov (!%p180_p3), 0.0   ;;  %vm1023_vm0 = vmmov (!%p180_p3), 0   ;;  %vm239_vm1 = vcmask (!%p180_p3), 64512   ;;  %s1024_s23 = smov (!%p180_p3), 120   ;;  %vm313_vm2 = vcmask (!%p180_p3), 1043456  }
   0x7   : > { %183 = sbr.rel (%p180_p3) target bundleno = 1134 (0x46e), region = 32  ;;  %891 = vmatprep.subr.bf16.mxu0 (!%p180_p3), %v1022_v0  ;;  %893 = vmatprep.mubr.msk.bf16.mxu0 (!%p180_p3), %vm1023_vm0, %v1022_v0  ;;  %s1025_s24 = smov (!%p180_p3), 112   ;;  %vm359_vm3 = vcmask (!%p180_p3), 60416   ;;  %vm488_vm4 = vcmask (!%p180_p3), 126016   ;;  %vm617_vm5 = vcmask (!%p180_p3), 191616   ;;  %vm746_vm6 = vcmask (!%p180_p3), 257216  }
   0x8   : > { %897 = vmatprep.subr.bf16.mxu1 (!%p180_p3), %v1022_v0  ;;  %899 = vmatprep.mubr.msk.bf16.mxu1 (!%p180_p3), %vm1023_vm0, %v1022_v0  ;;  %s1026_s25 = smov (!%p180_p3), 104   ;;  %s1027_s29 = smov (!%p180_p3), 96  }
   0x9   : > { %s1028_s30 = smov (!%p180_p3), 88   ;;  %s1029_s4 = smov (!%p180_p3), 72  }
   0xa   : > { %s1030_s5 = smov (!%p180_p3), 80   ;;  %s1031_s9 = smov (!%p180_p3), 8  }
   0xb   : > { %s1032_s10 = smov (!%p180_p3), 16   ;;  %s1033_s11 = smov (!%p180_p3), 24  }
   0xe   : > { %s1191_s12 = smov (!%p214_p4, %s1012_s12), 1 }
   0xf   : > { %s1081_s16 = sshll.u32 %s1191_s12, 2  ;;  %s216_s28 = scalar_lea.vmem %s1182_s0, %s1191_s12 }
  0x10   : > { %s227_s19 = scalar_lea.vmem %s1184_s2, %s1081_s16  ;;  %s223_s22 = scalar_lea.vmem %s1183_s1, %s1081_s16  ;;  %v1109_v11 = vld [vmem:[%s216_s28] ss:$0 sm:$0xff] }
  0x11   : > { %v238_v1 = vld [vmem:[%s227_s19] sm:$0xf]  ;;  %s1167_s8 = scalar_lea.vmem %s1185_s3, %s1081_s16 }
  0x12   : > { %v244_v2 = vsel %vm239_vm1, %v238_v1, 0  ;;  %v237_v3 = vld [vmem:[%s223_s22] sm:$0xf]  ;;  %v853_v18 = vcombine.low %v238_v1, %v238_v1 }
  0x13   : > { %892 = vmatpush3.bf16.xpose.msra.mxu0 %v244_v2  ;;  %v1096_v4 = vld [vmem:[%s227_s19] ss:$0 sps:$4 sm:$0xff]  }
  0x14   : > { %909 = vmatprep.subr.bf16.mxu0 %v1022_v0  ;;  %371 = vrot.lane.b32.xlu1 %v1096_v4, %s1024_s23  ;;  %v977_v5 = vld [vmem:[%s223_s22] ss:$0 sps:$4 sm:$0xff]  }
  0x15   : > { %v1099_v6 = vld [vmem:[%s227_s19] ss:$0 sps:$4 sm:$0xff]  }
  0x16   : > { %v979_v7 = vld [vmem:[%s223_s22] ss:$0 sps:$4 sm:$0xff]  }
  0x17   : > { %v1102_v8 = vld [vmem:[%s227_s19] ss:$0 sps:$4 sm:$0xff]  }
  0x18   : > { %366 = vrot.lane.b32.xlu1 %v977_v5, %s1024_s23  ;;  %v981_v9 = vld [vmem:[%s223_s22] ss:$0 sps:$4 sm:$0xff]  }
  0x1a   : > { %894 = vmatmul.mubr.msk.bf16.vlgmr.msra.gmra.mrb[0].mxu0 %vm239_vm1, %v237_v3 }
  0x1b   : > { %911 = vmatprep.mubr.msk.bf16.mxu0 %vm1023_vm0, %v1022_v0 }
  0x1c   : > { %500 = vrot.lane.b32.xlu1 %v1099_v6, %s1025_s24 }
  0x20   : > { %495 = vrot.lane.b32.xlu1 %v979_v7, %s1025_s24 }
  0x24   : > { %629 = vrot.lane.b32.xlu1 %v1102_v8, %s1026_s25 }
  0x28   : > { %624 = vrot.lane.b32.xlu1 %v981_v9, %s1026_s25 }
  0x86   : > { %v372_v24 = vpop.permute.xlu1 %371 }
  0x87   : > { %v377_v27 = vsel %vm239_vm1, %v372_v24, 0 }
  0x8a   : > { %v367_v25 = vpop.permute.xlu1 %366 }
  0x8e   : > { %v501_v29 = vpop.permute.xlu1 %500 }
  0x8f   : > { %v506_v31 = vsel %vm239_vm1, %v501_v29, 0 }
  0x92   : > { %v496_v30 = vpop.permute.xlu1 %495 }
  0x96   : > { %v630_v32 = vpop.permute.xlu1 %629 }
  0x97   : > { %v635_v33 = vsel %vm239_vm1, %v630_v32, 0 }
  0x9a   : > { %v625_v34 = vpop.permute.xlu1 %624 }
  0xed   : > { %v280_v10 = vpop.f32.mrb[0].mxu0 }
  0xee   : > { %v286_v12 = vmul.f32 0.35355338, %v280_v10  ;;  %v895_v13 = vpop.f32.mrb[1].mxu0 }
  0xef   : > { %v283_v14 = vpop.f32.mrb[2].mxu0 }
  0xf0   : > { %v896_v15 = vpop.f32.mrb[3].mxu0  ;;  %v293_v16 = vadd.f32 %v1109_v11, %v286_v12 }
  0xf2   : > { %v294_v17 = vsel %vm239_vm1, %v293_v16, -inf }
  0xf3   : > { %295 = vmax.xlane.f32.xlu0 %v294_v17 }
 0x109   : > { %308 = vrot.lane.b32.xlu0 %v853_v18, %s1027_s29 }
 0x180   : > { %v296_v19 = vpop.xlane.xlu0 %295 }
 0x181   : > { %v297_v20 = vsub.f32 %v293_v16, %v296_v19 }
 0x183   : > { %v298_v21 = vmul.f32 1.442695, %v297_v20 }
 0x184   : > { %v309_v22 = vpop.permute.xlu0 %308 }
 0x185   : > { %982 = vpow2.f32 %v298_v21  ;;  %v315_v23 = vsel %vm313_vm2, %v309_v22, 0 }
 0x186   : > { %898 = vmatpush3.bf16.msra.mxu1 %v315_v23 }
 0x187   : > { %903 = vmatprep.subr.bf16.mxu1 %v1022_v0 }
 0x18f   : > { %v1115_v26 = vpop.eup %982 }
 0x190   : > { %v304_v28 = vpack.c.bf16 %v1115_v26, %v1115_v26  ;;  %v300_v12 = vsel %vm239_vm1, %v1115_v26, 0.0 }
 0x192   : > { %900 = vmatmul.mubr.msk.bf16.vlgmr.msra.gmra.mrb[0].mxu1 %vm239_vm1, %v304_v28 }
 0x193   : > { %904 = vmatpush3.bf16.xpose.msra.mxu1 %v377_v27  ;;  %905 = vmatprep.mubr.msk.bf16.mxu1 %vm1023_vm0, %v1022_v0 }
 0x194   : > { %915 = vmatprep.subr.bf16.mxu1 %v1022_v0 }
 0x19a   : > { %906 = vmatmul.mubr.msk.bf16.vlgmr.msra.gmra.mrb[4].mxu1 %vm239_vm1, %v367_v25 }
 0x19b   : > { %916 = vmatpush3.bf16.xpose.msra.mxu1 %v506_v31  ;;  %917 = vmatprep.mubr.msk.bf16.mxu1 %vm1023_vm0, %v1022_v0 }
 0x19c   : > { %927 = vmatprep.subr.bf16.mxu1 %v1022_v0 }
 0x1a2   : > { %918 = vmatmul.mubr.msk.bf16.vlgmr.msra.gmra.mrb[8].mxu1 %vm239_vm1, %v496_v30 }
 0x1a3   : > { %928 = vmatpush3.bf16.xpose.msra.mxu1 %v635_v33  ;;  %929 = vmatprep.mubr.msk.bf16.mxu1 %vm1023_vm0, %v1022_v0 }
 0x1aa   : > { %930 = vmatmul.mubr.msk.bf16.vlgmr.msra.gmra.mrb[12].mxu1 %vm239_vm1, %v625_v34 }
 0x265   : > { %v1134_v35 = vpop.f32.mrb[0].mxu1 }
 0x266   : > { %v901_v36 = vpop.f32.mrb[1].mxu1 }
 0x267   : > { %v354_v37 = vpop.f32.mrb[2].mxu1 }
 0x268   : > { %v902_v38 = vpop.f32.mrb[3].mxu1 }
 0x26d   : > { %v413_v39 = vpop.f32.mrb[4].mxu1 }
 0x26e   : > { %v419_v40 = vmul.f32 0.35355338, %v413_v39  ;;  %v907_v41 = vpop.f32.mrb[5].mxu1 }
 0x26f   : > { %v416_v42 = vpop.f32.mrb[6].mxu1 }
 0x270   : > { %v908_v43 = vpop.f32.mrb[7].mxu1  ;;  %v420_v44 = vadd.f32 %v1109_v11, %v419_v40 }
 0x272   : > { %v421_v45 = vsel %vm239_vm1, %v420_v44, -inf }
 0x273   : > { %422 = vmax.xlane.f32.xlu1 %v421_v45 }
 0x275   : > { %v542_v46 = vpop.f32.mrb[8].mxu1 }
 0x276   : > { %v548_v47 = vmul.f32 0.35355338, %v542_v46  ;;  %v919_v48 = vpop.f32.mrb[9].mxu1 }
 0x277   : > { %v545_v49 = vpop.f32.mrb[10].mxu1 }
 0x278   : > { %v920_v50 = vpop.f32.mrb[11].mxu1  ;;  %v549_v51 = vadd.f32 %v1109_v11, %v548_v47 }
 0x27a   : > { %v550_v52 = vsel %vm239_vm1, %v549_v51, -inf }
 0x27b   : > { %551 = vmax.xlane.f32.xlu0 %v550_v52 }
 0x27d   : > { %v671_v53 = vpop.f32.mrb[12].mxu1 }
 0x27e   : > { %v677_v54 = vmul.f32 0.35355338, %v671_v53  ;;  %v931_v55 = vpop.f32.mrb[13].mxu1 }
 0x27f   : > { %v674_v56 = vpop.f32.mrb[14].mxu1 }
 0x280   : > { %v932_v57 = vpop.f32.mrb[15].mxu1  ;;  %v678_v58 = vadd.f32 %v1109_v11, %v677_v54 }
 0x282   : > { %v679_v59 = vsel %vm239_vm1, %v678_v58, -inf }
 0x283   : > { %680 = vmax.xlane.f32.xlu0 %v679_v59 }
 0x284   : > { %432 = vrot.lane.b32.xlu1 %v1096_v4, %s1028_s30 }
 0x288   : > { %690 = vrot.lane.b32.xlu1 %v1102_v8, %s1029_s4 }
 0x299   : > { %561 = vrot.lane.b32.xlu0 %v1099_v6, %s1030_s5 }
 0x300   : > { %v423_v60 = vpop.xlane.xlu1 %422 }
 0x301   : > { %v424_v61 = vsub.f32 %v420_v44, %v423_v60 }
 0x303   : > { %v425_v62 = vmul.f32 1.442695, %v424_v61 }
 0x304   : > { %v433_v63 = vpop.permute.xlu1 %432 }
 0x305   : > { %984 = vpow2.f32 %v425_v62  ;;  %v438_v1 = vsel %vm313_vm2, %v433_v63, 0 }
 0x306   : > { %910 = vmatpush3.bf16.msra.mxu0 %v438_v1 }
 0x307   : > { %921 = vmatprep.subr.bf16.mxu0 %v1022_v0 }
 0x308   : > { %v552_v2 = vpop.xlane.xlu0 %551  ;;  %v691_v14 = vpop.permute.xlu1 %690 }
 0x309   : > { %v553_v3 = vsub.f32 %v549_v51, %v552_v2  ;;  %v696_v18 = vsel %vm313_vm2, %v691_v14, 0 }
 0x30b   : > { %v554_v5 = vmul.f32 1.442695, %v553_v3 }
 0x30d   : > { %986 = vpow2.f32 %v554_v5 }
 0x30f   : > { %v985_v4 = vpop.eup %984 }
 0x310   : > { %v681_v7 = vpop.xlane.xlu0 %680  ;;  %v427_v8 = vsel %vm239_vm1, %v985_v4, 0.0  ;;  %v431_v9 = vpack.c.bf16 %v985_v4, %v985_v4 }
 0x311   : > { %v682_v6 = vsub.f32 %v678_v58, %v681_v7  ;;  %428 = vadd.xlane.f32.xlu1 %v427_v8 }
 0x312   : > { %912 = vmatmul.mubr.msk.bf16.vlgmr.msra.gmra.mrb[4].mxu0 %vm239_vm1, %v431_v9 }
 0x313   : > { %v683_v10 = vmul.f32 1.442695, %v682_v6  ;;  %923 = vmatprep.mubr.msk.bf16.mxu0 %vm1023_vm0, %v1022_v0 }
 0x314   : > { %v562_v11 = vpop.permute.xlu0 %561 }
 0x315   : > { %988 = vpow2.f32 %v683_v10  ;;  %v567_v13 = vsel %vm313_vm2, %v562_v11, 0  ;;  %301 = vadd.xlane.f32.xlu1 %v300_v12 }
 0x316   : > { %922 = vmatpush3.bf16.msra.mxu0 %v567_v13 }
 0x317   : > { %v987_v15 = vpop.eup %986  ;;  %933 = vmatprep.subr.bf16.mxu0 %v1022_v0 }
 0x318   : > { %v556_v16 = vsel %vm239_vm1, %v987_v15, 0.0  ;;  %v560_v17 = vpack.c.bf16 %v987_v15, %v987_v15 }
 0x319   : > { %557 = vadd.xlane.f32.xlu0 %v556_v16 }
 0x31a   : > { %924 = vmatmul.mubr.msk.bf16.vlgmr.msra.gmra.mrb[8].mxu0 %vm239_vm1, %v560_v17 }
 0x31b   : > { %934 = vmatpush3.bf16.msra.mxu0 %v696_v18  ;;  %935 = vmatprep.mubr.msk.bf16.mxu0 %vm1023_vm0, %v1022_v0 }
 0x31f   : > { %v989_v19 = vpop.eup %988 }
 0x320   : > { %v685_v20 = vsel %vm239_vm1, %v989_v19, 0.0  ;;  %v689_v21 = vpack.c.bf16 %v989_v19, %v989_v19 }
 0x321   : > { %686 = vadd.xlane.f32.xlu0 %v685_v20 }
 0x322   : > { %936 = vmatmul.mubr.msk.bf16.vlgmr.msra.gmra.mrb[12].mxu0 %vm239_vm1, %v689_v21 }
 0x39e   : > { %v429_v22 = vpop.xlane.xlu1 %428 }
 0x3a2   : > { %v302_v23 = vpop.xlane.xlu1 %301 }
 0x3a3   : > { %990 = vrcp.f32 %v302_v23 }
 0x3a4   : > { %992 = vrcp.f32 %v429_v22 }
 0x3a6   : > { %v558_v26 = vpop.xlane.xlu0 %557 }
 0x3a7   : > { %994 = vrcp.f32 %v558_v26 }
 0x3ad   : > { %v991_v24 = vpop.eup %990 }
 0x3ae   : > { %v357_v25 = vmul.f32 %v991_v24, %v1134_v35  ;;  %v993_v27 = vpop.eup %992  ;;  %v687_v32 = vpop.xlane.xlu0 %686 }
 0x3af   : > { %996 = vrcp.f32 %v687_v32 }
 0x3b0   : > { %v358_v0 = vpack.c.bf16 %v357_v25, %v357_v25 }
 0x3b1   : > { %v995_v35 = vpop.eup %994 }
 0x3b2   : > { %360 = vst.msk [vmem:[%s1167_s8] sm:$0xf] %vm359_vm3, %v358_v0 }
 0x3b9   : > { %v997_v42 = vpop.eup %996 }
 0x3e5   : > { %v474_v28 = vpop.f32.mrb[4].mxu0 }
 0x3e6   : > { %v480_v29 = vmul.f32 %v993_v27, %v474_v28  ;;  %v913_v30 = vpop.f32.mrb[5].mxu0 }
 0x3e7   : > { %v477_v31 = vpop.f32.mrb[6].mxu0 }
 0x3e8   : > { %v872_v33 = vpack.c.bf16 %v480_v29, %v480_v29  ;;  %v914_v34 = vpop.f32.mrb[7].mxu0 }
 0x3ea   : > { %485 = vrot.lane.b32.xlu0 %v872_v33, %s1031_s9 }
 0x3ed   : > { %v603_v36 = vpop.f32.mrb[8].mxu0 }
 0x3ee   : > { %v609_v37 = vmul.f32 %v995_v35, %v603_v36  ;;  %v925_v38 = vpop.f32.mrb[9].mxu0 }
 0x3ef   : > { %v606_v39 = vpop.f32.mrb[10].mxu0 }
 0x3f0   : > { %v873_v40 = vpack.c.bf16 %v609_v37, %v609_v37  ;;  %v926_v41 = vpop.f32.mrb[11].mxu0 }
 0x3f2   : > { %614 = vrot.lane.b32.xlu1 %v873_v40, %s1032_s10 }
 0x3f5   : > { %v732_v43 = vpop.f32.mrb[12].mxu0 }
 0x3f6   : > { %v738_v44 = vmul.f32 %v997_v42, %v732_v43  ;;  %v937_v45 = vpop.f32.mrb[13].mxu0 }
 0x3f7   : > { %v735_v46 = vpop.f32.mrb[14].mxu0 }
 0x3f8   : > { %v874_v47 = vpack.c.bf16 %v738_v44, %v738_v44  ;;  %v938_v48 = vpop.f32.mrb[15].mxu0 }
 0x3fa   : > { %743 = vrot.lane.b32.xlu1 %v874_v47, %s1033_s11 }
 0x45c   : > { %v486_v49 = vpop.permute.xlu0 %485 }
 0x45d   : > { %489 = vst.msk [vmem:[%s1167_s8] sm:$0xf] %vm488_vm4, %v486_v49 }
 0x464   : > { %v615_v50 = vpop.permute.xlu1 %614 }
 0x465   : > { %618 = vst.msk [vmem:[%s1167_s8] sm:$0xf] %vm617_vm5, %v615_v50 }
 0x46c   : > { %v744_v51 = vpop.permute.xlu1 %743 }
 0x46d   : > { %747 = vst.msk [vmem:[%s1167_s8] sm:$0xf] %vm746_vm6, %v744_v51 }
 0x46e PF: > { %s13_s14 = sadd.s32 1, %s1020_s14   ;;  %s1186_s12 = smov %s1016_s13 }
 0x46f   : > { %p10_p5 = scmp.ge.s32.totalorder %s13_s14, 4   ;;  %s1187_s13 = smov %s1189_s15 }
 0x471   :  { %12 = sbr.rel (!%p10_p5) target bundleno = 2 (0x2), region = 68 }

// kernel: transformer_decoder_forward.25
= control target key start
LH: loop header
LB: loop body
LE: loop exit
PB: predicated region body
PF: predicated region fallthrough
CT: control target
= control target key end

     0   :  { %vm44_vm0 = vcmask 261120   ;;  %v347_v0 = vmov 0.0   ;;  %vm348_vm1 = vmmov 0   ;;  %vm165_vm2 = vcmask 523264   ;;  %s447_s1 = inlined_call_operand.vmem [shape: bf16[64,32], index: 1, kind: input, shape index: {}]   ;;  %s448_s0 = inlined_call_operand.vmem [shape: bf16[16,32], index: 0, kind: input, shape index: {}]   ;;  %s449_s3 = inlined_call_operand.vmem [shape: bf16[32,64], index: 3, kind: input, shape index: {}]   ;;  %s450_s4 = inlined_call_operand.vmem [shape: f32[1,32], index: 4, kind: input, shape index: {}]   ;;  %s451_s2 = inlined_call_operand.vmem [shape: f32[1,64], index: 2, kind: input, shape index: {}]   ;;  %s452_s5 = inlined_call_operand.vmem [shape: f32[1,32], index: 5, kind: input, shape index: {}]   ;;  %s453_s6 = inlined_call_operand.vmem [shape: f32[1,32], index: 6, kind: input, shape index: {}]   ;;  %s454_s7 = inlined_call_operand.vmem [shape: bf16[16,32], index: 7, kind: output, shape index: {}]  }
   0x1   :  { %314 = vmatprep.subr.bf16.mxu0 %v347_v0  ;;  %v336_v1 = vld [vmem:[%s447_s1] sm:$0xff]   ;;  %322 = vmatprep.mubr.msk.bf16.mxu0 %vm348_vm1, %v347_v0  ;;  %v337_v3 = vld [vmem:[%s447_s1 + $0x8] sm:$0xff]   ;;  %v338_v7 = vld [vmem:[%s447_s1 + $0x10] sm:$0xff]   ;;  %vm278_vm3 = vcmask 257024  }
   0x2   :  { %326 = vmatprep.subr.bf16.mxu1 %v347_v0  ;;  %330 = vmatprep.mubr.msk.bf16.mxu1 %vm348_vm1, %v347_v0  ;;  %v94_v2 = vsel %vm44_vm0, %v336_v1, 0  ;;  %v341_v4 = vld [vmem:[%s449_s3] sm:$0xff]   ;;  %v97_v5 = vsel %vm44_vm0, %v337_v3, 0  ;;  %v100_v8 = vsel %vm44_vm0, %v338_v7, 0  ;;  %v339_v9 = vld [vmem:[%s447_s1 + $0x18] sm:$0xff]   ;;  %v342_v12 = vld [vmem:[%s449_s3 + $0x8] sm:$0xff]  }
   0x3   :  { %315 = vmatpush3.bf16.xpose.msra.mxu0 %v94_v2  ;;  %v170_v6 = vsel %vm165_vm2, %v341_v4, 0  ;;  %v103_v10 = vsel %vm44_vm0, %v339_v9, 0  ;;  %v340_v11 = vld [vmem:[%s448_s0] sm:$0xff]   ;;  %v173_v13 = vsel %vm165_vm2, %v342_v12, 0 }
   0x4   :  { %316 = vmatprep.subr.bf16.mxu0 %v347_v0  ;;  %327 = vmatpush3.bf16.xpose.msra.mxu1 %v170_v6  ;;  %v303_v14 = vld [vmem:[%s448_s0] sm:$0xff]  }
   0x5   :  { %328 = vmatprep.subr.bf16.mxu1 %v347_v0  ;;  %v304_v15 = vunpack.c.l.bf16 %v303_v14  ;;  %v285_v16 = vld [vmem:[%s450_s4] ss:$0 sm:$0xff]  ;;  %v305_v28 = vunpack.c.h.bf16 %v303_v14 }
   0x6   :  { %v286_v18 = vld [vmem:[%s451_s2] ss:$0 sm:$0xff] }
   0x7   :  { %v42_v17 = vadd.f32 %v304_v15, %v285_v16  ;;  %v43_v29 = vadd.f32 %v305_v28, %v285_v16  ;;  %v296_v59 = vld [vmem:[%s452_s5] ss:$0 sm:$0xff] }
   0x8   :  { %v297_v61 = vld [vmem:[%s453_s6] ss:$0 sm:$0xff] }
   0x9   :  { %45 = vst.msk [vmem:[#allocation2] sm:$0xff] %vm44_vm0, %v42_v17  ;;  %46 = vst.msk [vmem:[#allocation2 + $0x8] sm:$0xff] %vm44_vm0, %v43_v29 }
   0xb   :  { %317 = vmatpush3.bf16.xpose.msra.mxu0 %v97_v5 }
   0xc   :  { %318 = vmatprep.subr.bf16.mxu0 %v347_v0  ;;  %329 = vmatpush3.bf16.xpose.msra.mxu1 %v173_v13 }
  0x10   :  { %v149_v30 = vld [vmem:[#allocation2] sm:$0xff]  ;;  %v150_v32 = vld [vmem:[#allocation2 + $0x8] sm:$0xff] }
  0x13   :  { %319 = vmatpush3.bf16.xpose.msra.mxu0 %v100_v8 }
  0x14   :  { %320 = vmatprep.subr.bf16.mxu0 %v347_v0 }
  0x1b   :  { %321 = vmatpush3.bf16.xpose.msra.mxu0 %v103_v10 }
  0x22   :  { %323 = vmatmul.mubr.msk.bf16.vlgmr.msra.gmra.mrb[0].mxu0 %vm44_vm0, %v340_v11 }
  0xf5   :  { %v139_v19 = vpop.f32.mrb[0].mxu0 }
  0xf6   :  { %v140_v20 = vadd.f32 %v286_v18, %v139_v19  ;;  %v324_v21 = vpop.f32.mrb[1].mxu0 }
  0xf7   :  { %v142_v22 = vpop.f32.mrb[2].mxu0 }
  0xf8   :  { %v143_v23 = vadd.f32 %v286_v18, %v142_v22  ;;  %v325_v24 = vpop.f32.mrb[3].mxu0  ;;  %v146_v25 = vmax.f32 %v140_v20, 0.0 }
  0xfa   :  { %v147_v26 = vmax.f32 %v143_v23, 0.0 }
  0xfc   :  { %v148_v27 = vpack.c.bf16 %v147_v26, %v146_v25 }
  0xfe   :  { %331 = vmatmul.mubr.msk.bf16.vlgmr.msra.gmra.mrb[0].mxu1 %vm165_vm2, %v148_v27 }
 0x1d1   :  { %v209_v31 = vpop.f32.mrb[0].mxu1 }
 0x1d2   :  { %v216_v33 = vadd.f32 %v209_v31, %v149_v30  ;;  %v332_v34 = vpop.f32.mrb[1].mxu1 }
 0x1d3   :  { %v212_v35 = vpop.f32.mrb[2].mxu1 }
 0x1d4   :  { %218 = vst.msk [vmem:[#allocation2] sm:$0xff] %vm44_vm0, %v216_v33  ;;  %v217_v36 = vadd.f32 %v212_v35, %v150_v32  ;;  %v333_v37 = vpop.f32.mrb[3].mxu1 }
 0x1d6   :  { %219 = vst.msk [vmem:[#allocation2 + $0x8] sm:$0xff] %vm44_vm0, %v217_v36 }
 0x1db   :  { %v223_v38 = vld [vmem:[#allocation2] sm:$0xff] }
 0x1dc   :  { %v227_v39 = vsel %vm44_vm0, %v223_v38, 0.0 }
 0x1dd   :  { %228 = vadd.xlane.f32.xlu0 %v227_v39  ;;  %v224_v40 = vld [vmem:[#allocation2 + $0x8] sm:$0xff] }
 0x1de   :  { %v230_v41 = vsel %vm44_vm0, %v224_v40, 0.0 }
 0x1e1   :  { %231 = vadd.xlane.f32.xlu0 %v230_v41 }
 0x26a   :  { %v229_v42 = vpop.xlane.xlu0 %228 }
 0x26b   :  { %v234_v43 = vmul.f32 0.03125, %v229_v42 }
 0x26d   :  { %v236_v44 = vsub.f32 %v223_v38, %v234_v43 }
 0x26e   :  { %v232_v45 = vpop.xlane.xlu0 %231 }
 0x26f   :  { %v235_v46 = vmul.f32 0.03125, %v232_v45  ;;  %v238_v47 = vmul.f32 %v236_v44, %v236_v44 }
 0x271   :  { %v237_v48 = vsub.f32 %v224_v40, %v235_v46  ;;  %v240_v49 = vsel %vm44_vm0, %v238_v47, 0.0 }
 0x272   :  { %241 = vadd.xlane.f32.xlu1 %v240_v49 }
 0x273   :  { %v239_v50 = vmul.f32 %v237_v48, %v237_v48 }
 0x275   :  { %v243_v51 = vsel %vm44_vm0, %v239_v50, 0.0 }
 0x276   :  { %244 = vadd.xlane.f32.xlu1 %v243_v51 }
 0x2ff   :  { %v242_v52 = vpop.xlane.xlu1 %241 }
 0x300   :  { %v246_v53 = vmul.f32 0.03125, %v242_v52 }
 0x302   :  { %v248_v54 = vadd.f32 1e-05, %v246_v53 }
 0x303   :  { %v245_v55 = vpop.xlane.xlu1 %244 }
 0x304   :  { %343 = vrsqrt.f32 %v248_v54  ;;  %v247_v56 = vmul.f32 0.03125, %v245_v55 }
 0x306   :  { %v249_v57 = vadd.f32 1e-05, %v247_v56 }
 0x308   :  { %345 = vrsqrt.f32 %v249_v57 }
 0x30e   :  { %v344_v58 = vpop.eup %343 }
 0x30f   :  { %v252_v60 = vmul.f32 %v344_v58, %v236_v44 }
 0x311   :  { %v260_v62 = vmul.f32 %v296_v59, %v252_v60 }
 0x312   :  { %v346_v63 = vpop.eup %345 }
 0x313   :  { %v268_v0 = vadd.f32 %v297_v61, %v260_v62  ;;  %v253_v1 = vmul.f32 %v346_v63, %v237_v48 }
 0x315   :  { %v300_v2 = vpack.c.bf16 %v268_v0, %v268_v0  ;;  %v261_v3 = vmul.f32 %v296_v59, %v253_v1 }
 0x317   :  { %279 = vst.msk [vmem:[%s454_s7] sm:$0xf] %vm278_vm3, %v300_v2  ;;  %v269_v4 = vadd.f32 %v297_v61, %v261_v3 }
 0x319   :  { %v301_v5 = vpack.c.bf16 %v269_v4, %v269_v4 }
 0x31b   :  { %280 = vst.msk [vmem:[%s454_s7 + $0x4] sm:$0xf] %vm278_vm3, %v301_v5 }

// kernel: transformer_decoder_forward.34
= control target key start
LH: loop header
LB: loop body
LE: loop exit
PB: predicated region body
PF: predicated region fallthrough
CT: control target
= control target key end

     0   :  { %vm20_vm0 = vcmask 261120   ;;  %vm72_vm1 = vcmask 257024   ;;  %s132_s0 = inlined_call_operand.vmem [shape: bf16[16,32], index: 0, kind: input, shape index: {}]   ;;  %s133_s1 = inlined_call_operand.vmem [shape: f32[1,32], index: 1, kind: input, shape index: {}]   ;;  %s134_s2 = inlined_call_operand.vmem [shape: f32[1,32], index: 2, kind: input, shape index: {}]   ;;  %s135_s3 = inlined_call_operand.vmem [shape: bf16[16,32], index: 3, kind: output, shape index: {}]  }
   0x1   :  { %v86_v0 = vld [vmem:[%s132_s0] sm:$0xff]  }
   0x2   :  { %v87_v1 = vunpack.c.l.bf16 %v86_v0  ;;  %v88_v2 = vunpack.c.h.bf16 %v86_v0  ;;  %v79_v22 = vld [vmem:[%s133_s1] ss:$0 sm:$0xff] }
   0x3   :  { %v80_v24 = vld [vmem:[%s134_s2] ss:$0 sm:$0xff] }
   0x4   :  { %v21_v3 = vsel %vm20_vm0, %v87_v1, 0.0  ;;  %v24_v4 = vsel %vm20_vm0, %v88_v2, 0.0 }
   0x5   :  { %22 = vadd.xlane.f32.xlu0 %v21_v3 }
   0x9   :  { %25 = vadd.xlane.f32.xlu0 %v24_v4 }
  0x92   :  { %v23_v5 = vpop.xlane.xlu0 %22 }
  0x93   :  { %v28_v6 = vmul.f32 0.03125, %v23_v5 }
  0x95   :  { %v30_v7 = vsub.f32 %v87_v1, %v28_v6 }
  0x96   :  { %v26_v8 = vpop.xlane.xlu0 %25 }
  0x97   :  { %v29_v9 = vmul.f32 0.03125, %v26_v8  ;;  %v32_v10 = vmul.f32 %v30_v7, %v30_v7 }
  0x99   :  { %v31_v11 = vsub.f32 %v88_v2, %v29_v9  ;;  %v34_v12 = vsel %vm20_vm0, %v32_v10, 0.0 }
  0x9a   :  { %35 = vadd.xlane.f32.xlu1 %v34_v12 }
  0x9b   :  { %v33_v13 = vmul.f32 %v31_v11, %v31_v11 }
  0x9d   :  { %v37_v14 = vsel %vm20_vm0, %v33_v13, 0.0 }
  0x9e   :  { %38 = vadd.xlane.f32.xlu1 %v37_v14 }
 0x127   :  { %v36_v15 = vpop.xlane.xlu1 %35 }
 0x128   :  { %v40_v16 = vmul.f32 0.03125, %v36_v15 }
 0x12a   :  { %v42_v17 = vadd.f32 1e-05, %v40_v16 }
 0x12b   :  { %v39_v18 = vpop.xlane.xlu1 %38 }
 0x12c   :  { %89 = vrsqrt.f32 %v42_v17  ;;  %v41_v19 = vmul.f32 0.03125, %v39_v18 }
 0x12e   :  { %v43_v20 = vadd.f32 1e-05, %v41_v19 }
 0x130   :  { %91 = vrsqrt.f32 %v43_v20 }
 0x136   :  { %v90_v21 = vpop.eup %89 }
 0x137   :  { %v46_v23 = vmul.f32 %v90_v21, %v30_v7 }
 0x139   :  { %v54_v25 = vmul.f32 %v79_v22, %v46_v23 }
 0x13a   :  { %v92_v26 = vpop.eup %91 }
 0x13b   :  { %v62_v27 = vadd.f32 %v80_v24, %v54_v25  ;;  %v47_v28 = vmul.f32 %v92_v26, %v31_v11 }
 0x13d   :  { %v83_v29 = vpack.c.bf16 %v62_v27, %v62_v27  ;;  %v55_v30 = vmul.f32 %v79_v22, %v47_v28 }
 0x13f   :  { %73 = vst.msk [vmem:[%s135_s3] sm:$0xf] %vm72_vm1, %v83_v29  ;;  %v63_v31 = vadd.f32 %v80_v24, %v55_v30 }
 0x141   :  { %v84_v32 = vpack.c.bf16 %v63_v31, %v63_v31 }
 0x143   :  { %74 = vst.msk [vmem:[%s135_s3 + $0x4] sm:$0xf] %vm72_vm1, %v84_v32 }

// kernel: transformer_decoder_forward.35
= control target key start
LH: loop header
LB: loop body
LE: loop exit
PB: predicated region body
PF: predicated region fallthrough
CT: control target
= control target key end

     0   :  { %v178_v1 = vmov 0.0   ;;  %vm45_vm0 = vcmask 261120   ;;  %vm179_vm1 = vmmov 0   ;;  %s230_s0 = inlined_call_operand.vmem [shape: bf16[16,32], index: 0, kind: input, shape index: {}]   ;;  %s231_s1 = inlined_call_operand.vmem [shape: bf16[50,32], index: 1, kind: input, shape index: {}]   ;;  %s232_s2 = inlined_call_operand.hbm [shape: f32[16,50], index: 2, kind: output, shape index: {}]  }
   0x1   :  { %v149_v0 = vld [vmem:[%s231_s1] sm:$0xff]   ;;  %132 = vmatprep.subr.bf16.mxu0 %v178_v1  ;;  %v150_v3 = vld [vmem:[%s231_s1 + $0x8] sm:$0xff]   ;;  %140 = vmatprep.mubr.msk.bf16.mxu0 %vm179_vm1, %v178_v1 }
   0x2   :  { %v50_v2 = vsel %vm45_vm0, %v149_v0, 0 }
   0x3   :  { %133 = vmatpush3.bf16.xpose.msra.mxu0 %v50_v2 }
   0x4   :  { %134 = vmatprep.subr.bf16.mxu0 %v178_v1 }
   0x5   :  { %7 = vsyncpa [#allocation3], 0  ;;  %v53_v4 = vsel %vm45_vm0, %v150_v3, 0  ;;  %v151_v5 = vld [vmem:[%s231_s1 + $0x10] sm:$0xff]   ;;  %v153_v9 = vld [vmem:[%s230_s0] sm:$0xff]   ;;  %s180_s19 = smov [#allocation2]  }
   0x6   :  { %v56_v6 = vsel %vm45_vm0, %v151_v5, 0  ;;  %v152_v7 = vld [vmem:[%s231_s1 + $0x18] ss:$0 sps:$4 sm:$0x11]   ;;  %s110_s20 = sshll.u32 %s180_s19, 4  ;;  %vm102_vm2 = vcmask 408576   ;;  %s111_s20 = int_to_ptr.vmem [resolvable:$true] %s110_s20 }
   0x7   :  { %v59_v8 = vsel %vm45_vm0, %v152_v7, 0  ;;  %s154_s1 = scalar_lea.vmem %s111_s20, 256  ;;  %p159_p1 = scmp.lt.s32.totalorder %s111_s20, %s111_s20 }
   0x8   :  { %p155_p0 = scmp.ne.s32.totalorder %s111_s20, %s154_s1  ;;  %p160_p2 = scmp.lt.s32.totalorder %s154_s1, %s154_s1 }
   0xa   :  { %p161_p3 = por %p160_p2, %p159_p1 }
   0xb   :  { %135 = vmatpush3.bf16.xpose.msra.mxu0 %v53_v4 }
   0xc   :  { %136 = vmatprep.subr.bf16.mxu0 %v178_v1  ;;  %p162_p4 = pnand %p161_p3, %p155_p0 }
  0x13   :  { %137 = vmatpush3.bf16.xpose.msra.mxu0 %v56_v6 }
  0x14   :  { %138 = vmatprep.subr.bf16.mxu0 %v178_v1 }
  0x1b   :  { %139 = vmatpush3.bf16.xpose.msra.mxu0 %v59_v8 }
  0x22   :  { %141 = vmatmul.mubr.msk.bf16.vlgmr.msra.gmra.mrb[0].mxu0 %vm45_vm0, %v153_v9 }
  0xf5   :  { %v95_v10 = vpop.f32.mrb[0].mxu0 }
  0xf6   :  { %103 = vst.msk [vmem:[#allocation2] sm:$0xff] %vm102_vm2, %v95_v10  ;;  %v142_v11 = vpop.f32.mrb[1].mxu0 }
  0xf7   :  { %v98_v12 = vpop.f32.mrb[2].mxu0 }
  0xf8   :  { %104 = vst.msk [vmem:[#allocation2 + $0x8] sm:$0xff] %vm102_vm2, %v98_v12  ;;  %v143_v13 = vpop.f32.mrb[3].mxu0 }
  0xf9   :  { %165 = shalt.err (!%p162_p4)
}
  0xfa   :  { %s166_s22 = scalar_lea.hbm %s232_s2, 256 }
  0xfb   :  { %p167_p5 = scmp.ne.s32.totalorder %s232_s2, %s166_s22  ;;  %p170_p6 = scmp.lt.u32.totalorder %s166_s22, %s232_s2 }
  0xfd   :  { %p172_p7 = pnand %p170_p6, %p167_p5 }
  0xff   :  { %175 = shalt.err (!%p172_p7)
}
 0x100   :  { %s181_s27 = smov 128   ;;  %s182_s28 = smov 8  }
 0x101   :  { %116 = dma.vmem_to_hbm [thread:$0]  %s111_s20, 256, %s232_s2, [#allocation3], %s181_s27, %s181_s27, %s182_s28  }
 0x102   :  { %176 = dma.done.wait [#allocation3], 256  }
 0x103   :  { %177 = vsyncadd [#allocation3], 4294967040 }
 0x104   :  { %120 = vsyncpa [#allocation3], 1 }

</bundles_post_ra>
